<compile_context>
chip_gen: v6e
topology: v6e:2x2x1
jax: 0.10.0
libtpu: 0.0.40
codegen_flags: <defaults>
</compile_context>

<pallas_src>
import functools

import jax
import jax.numpy as jnp
from jax.experimental import pallas as pl
from jax.experimental.pallas import tpu as pltpu


_NEG_BIG = -1e30  # finite "-inf" for masked (out-of-range) vocab columns


def _round_up(a, b):
    return (a + b - 1) // b * b


def _vmem_capacity_bytes():
    try:
        return int(pltpu.get_tpu_info().vmem_capacity_bytes)
    except Exception:
        return 128 * 1024 * 1024  # v5e / v6e default


# ----------------------------------------------------------------------------
# Pass 1: streamed logsumexp (and optional bf16 logit cache).
# grid = (vocab tile j [outer, reduction], row tile i [inner])
# ----------------------------------------------------------------------------
def _pass1_kernel(x_ref, w_ref, b_ref, *refs, v_total, cache_logits):
    if cache_logits:
        lse_ref, logit_ref, m_sc, l_sc = refs
    else:
        lse_ref, m_sc, l_sc = refs
        logit_ref = None

    j = pl.program_id(0)   # vocab tile (outer)
    i = pl.program_id(1)   # row tile (inner)

    # bf16 x bf16 -> f32 accumulation on the MXU; bias add in f32.
    logits = jnp.dot(x_ref[...], w_ref[...], preferred_element_type=jnp.float32)
    logits = logits + b_ref[...]                         # (tm, tv) f32

    if cache_logits:
        logit_ref[...] = logits.astype(logit_ref.dtype)

    tv = logits.shape[-1]
    if v_total % tv != 0:
        # Ragged last vocab tile: mask columns >= V so they vanish from the
        # logsumexp (exp(-1e30 - m) underflows to exactly 0 in f32).
        col = jax.lax.broadcasted_iota(jnp.int32, logits.shape, 1) + j * tv
        logits = jnp.where(col < v_total, logits, _NEG_BIG)

    @pl.when(j == 0)
    def _():
        # Finite "-inf" init: after the first tile m is finite, so the
        # exp(m_prev - m_new) rescale below is always well defined.
        m_sc[i] = jnp.full(m_sc.shape[1:], _NEG_BIG, m_sc.dtype)
        l_sc[i] = jnp.zeros(l_sc.shape[1:], l_sc.dtype)

    m_prev = m_sc[i]
    m_new = jnp.maximum(m_prev, jnp.max(logits, axis=-1, keepdims=True))
    l_new = (l_sc[i] * jnp.exp(m_prev - m_new)
             + jnp.sum(jnp.exp(logits - m_new), axis=-1, keepdims=True))
    m_sc[i] = m_new
    l_sc[i] = l_new

    # Write the *running* logsumexp every step: this output block is revisited
    # once per vocab tile; every write-back is finite/valid and the last visit
    # (j == grid_v - 1) leaves the exact per-row logsumexp in HBM.
    lse_ref[...] = m_new + jnp.log(l_new)


# ----------------------------------------------------------------------------
# Pass 2 (recompute variant): weight-resident grid order (vocab outer).
# ----------------------------------------------------------------------------
def _pass2_matmul_kernel(x_ref, w_ref, b_ref, lse_ref, o_ref):
    logits = jnp.dot(x_ref[...], w_ref[...], preferred_element_type=jnp.float32)
    logits = logits + b_ref[...]
    o_ref[...] = (logits - lse_ref[...]).astype(o_ref.dtype)


# ----------------------------------------------------------------------------
# Pass 2 (cached-logits variant): pure mem-bound subtract + cast.
# ----------------------------------------------------------------------------
def _pass2_cached_kernel(logit_ref, lse_ref, o_ref):
    logits = logit_ref[...].astype(jnp.float32)
    o_ref[...] = (logits - lse_ref[...]).astype(o_ref.dtype)


def projection_layer(x, weight_t, bias, *, tm=None, tv=None,
                     out_dtype=jnp.float32, compute_dtype=jnp.bfloat16,
                     cache_logits=None):
    """log_softmax(x @ weight_t + bias, axis=-1).

    x        : (B, T, d_model)
    weight_t : (d_model, vocab); pass it already cast to `compute_dtype` (bf16)
               to avoid a per-call cast of the large weight.
    bias     : (vocab,)
    returns  : (B, T, vocab) log-probabilities in `out_dtype`
               (pass out_dtype=jnp.bfloat16 to halve the dominant output write).
    """
    B, T, D = x.shape
    V = weight_t.shape[1]
    rows = B * T

    vmem_cap = _vmem_capacity_bytes()
    budget = int(vmem_cap * 0.82)    # leave Mosaic internal-scratch headroom
    if tm is None:
        tm = 256
    if tv is None:
        tv = 1024 if vmem_cap <= 96 * 1024 * 1024 else 2048   # v7x vs v5e/v6e
    if cache_logits is None:
        # For large d_model the pass-2 matmul recompute costs more than a bf16
        # logit round-trip through HBM.
        cache_logits = D >= 512

    # Row tile: multiple of 16 (bf16 sublane packing); vocab tile: multiple of
    # 128 lanes. Clamp so tiles never exceed the (floored) problem size; ragged
    # edges are handled by partial blocks + in-kernel masking, not padding.
    tm = _round_up(tm, 16)
    tv = _round_up(tv, 128)
    if rows >= 16:
        tm = min(tm, rows // 16 * 16)
    if V >= 128:
        tv = min(tv, V // 128 * 128)

    c = jnp.dtype(compute_dtype).itemsize
    o = jnp.dtype(out_dtype).itemsize
    lg = 2  # bf16 logit cache

    def _need(tm_, tv_):
        gr = pl.cdiv(rows, tm_)
        p1 = (2 * tm_ * D * c          # x tile (double buffered)
              + 2 * D * tv_ * c        # weight tile
              + 2 * tv_ * 4            # bias tile
              + 2 * tm_ * 4            # lse out
              + (2 * tm_ * tv_ * lg if cache_logits else 0)
              + 2 * gr * tm_ * 4       # m / l scratch (full rows)
              + 4 * tm_ * tv_ * 4)     # f32 logit / exp temporaries
        if cache_logits:
            p2 = (2 * tm_ * tv_ * lg + 2 * tm_ * 4
                  + 2 * tm_ * tv_ * o + 2 * tm_ * tv_ * 4)
        else:
            p2 = (2 * tm_ * D * c + 2 * D * tv_ * c + 2 * tv_ * 4 + 2 * tm_ * 4
                  + 2 * tm_ * tv_ * o + 2 * tm_ * tv_ * 4)
        return max(p1, p2)

    # Shrink tiles until the estimate fits the per-generation VMEM budget.
    while _need(tm, tv) > budget and tv > 256:
        tv = max(256, (tv // 2) // 128 * 128)
    while _need(tm, tv) > budget and tm > 64:
        tm = max(64, (tm // 2) // 16 * 16)

    grid_rows = pl.cdiv(rows, tm)
    grid_v = pl.cdiv(V, tv)
    vmem_limit = int(min(budget, max(32 * 1024 * 1024, int(_need(tm, tv) * 1.25))))

    # No host-side padding of the weight/bias (that would materialize a full
    # extra HBM copy of the (D, V) weight every call); cast only if needed.
    x2d = x.reshape(rows, D)
    if x2d.dtype != compute_dtype:
        x2d = x2d.astype(compute_dtype)
    w = weight_t if weight_t.dtype == compute_dtype else weight_t.astype(compute_dtype)
    b2d = bias.reshape(1, V)
    if b2d.dtype != jnp.float32:
        b2d = b2d.astype(jnp.float32)

    # Shared block specs, grid order = (vocab tile j, row tile i): weight/bias
    # block indices depend only on the outer axis -> resident across row tiles.
    x_spec = pl.BlockSpec((tm, D), lambda j, i: (i, 0))
    w_spec = pl.BlockSpec((D, tv), lambda j, i: (0, j))
    b_spec = pl.BlockSpec((1, tv), lambda j, i: (0, j))
    lse_spec = pl.BlockSpec((tm, 1), lambda j, i: (i, 0))
    logit_spec = pl.BlockSpec((tm, tv), lambda j, i: (i, j))

    # --------------------------- pass 1: logsumexp --------------------------
    p1_out_shape = [jax.ShapeDtypeStruct((rows, 1), jnp.float32)]
    p1_out_specs = [lse_spec]
    if cache_logits:
        p1_out_shape.append(jax.ShapeDtypeStruct((rows, V), jnp.bfloat16))
        p1_out_specs.append(logit_spec)

    p1 = pl.pallas_call(
        functools.partial(_pass1_kernel, v_total=V, cache_logits=cache_logits),
        out_shape=tuple(p1_out_shape),
        grid_spec=pltpu.PrefetchScalarGridSpec(
            num_scalar_prefetch=0,
            grid=(grid_v, grid_rows),
            in_specs=[x_spec, w_spec, b_spec],
            out_specs=tuple(p1_out_specs),
            scratch_shapes=[pltpu.VMEM((grid_rows, tm, 1), jnp.float32),
                            pltpu.VMEM((grid_rows, tm, 1), jnp.float32)],
        ),
        compiler_params=pltpu.CompilerParams(
            # Vocab (the reduction) must run in order; rows kept "arbitrary" as
            # well so the ordering is valid on every generation.
            dimension_semantics=("arbitrary", "arbitrary"),
            vmem_limit_bytes=vmem_limit,
        ),
    )(x2d, w, b2d)

    if cache_logits:
        lse, logits_cache = p1
    else:
        (lse,) = p1

    # ---------------------------- pass 2: log-probs -------------------------
    if cache_logits:
        out2d = pl.pallas_call(
            _pass2_cached_kernel,
            out_shape=jax.ShapeDtypeStruct((rows, V), out_dtype),
            grid_spec=pltpu.PrefetchScalarGridSpec(
                num_scalar_prefetch=0,
                grid=(grid_rows, grid_v),
                in_specs=[pl.BlockSpec((tm, tv), lambda i, j: (i, j)),
                          pl.BlockSpec((tm, 1), lambda i, j: (i, 0))],
                out_specs=pl.BlockSpec((tm, tv), lambda i, j: (i, j)),
            ),
            compiler_params=pltpu.CompilerParams(
                dimension_semantics=("parallel", "parallel"),
                vmem_limit_bytes=vmem_limit,
            ),
        )(logits_cache, lse)
    else:
        out2d = pl.pallas_call(
            _pass2_matmul_kernel,
            out_shape=jax.ShapeDtypeStruct((rows, V), out_dtype),
            grid_spec=pltpu.PrefetchScalarGridSpec(
                num_scalar_prefetch=0,
                grid=(grid_v, grid_rows),
                in_specs=[x_spec, w_spec, b_spec, lse_spec],
                out_specs=logit_spec,
            ),
            compiler_params=pltpu.CompilerParams(
                dimension_semantics=("parallel", "parallel"),
                vmem_limit_bytes=vmem_limit,
            ),
        )(x2d, w, b2d, lse)

    return out2d.reshape(B, T, V)


if __name__ == "__main__":
    # Small shapes exercising multi-tile rows, multi-tile vocab and ragged
    # edges (rows = 144 with tm = 128; vocab = 1000 with tv = 512).
    batch, seq, d_model, vocab_size = 2, 72, 128, 1000

    key = jax.random.PRNGKey(0)
    kx, kw, kb = jax.random.split(key, 3)

    x = jax.random.normal(kx, (batch, seq, d_model), dtype=jnp.float32)
    bound = 1.0 / (d_model ** 0.5)  # PyTorch Linear-style uniform init bound
    weight_t = jax.random.uniform(
        kw, (d_model, vocab_size), minval=-bound, maxval=bound, dtype=jnp.float32)
    bias = jax.random.uniform(
        kb, (vocab_size,), minval=-bound, maxval=bound, dtype=jnp.float32)

    # Keep the weight persistently in bf16 -> no per-call cast inside the wrapper.
    weight_bf16 = weight_t.astype(jnp.bfloat16)

    # Reference with the same bf16 matmul / f32 accumulation as the kernels.
    logits_ref = jnp.einsum(
        "btd,dv->btv", x.astype(jnp.bfloat16), weight_bf16,
        preferred_element_type=jnp.float32) + bias
    ref = jax.nn.log_softmax(logits_ref, axis=-1)

    # Path A: pass-2 recomputes the logits (weight-resident grid order).
    out_a = projection_layer(x, weight_bf16, bias, tm=128, tv=512,
                             cache_logits=False)
    out_a = jax.block_until_ready(out_a)
    assert out_a.shape == (batch, seq, vocab_size)
    assert bool(jnp.allclose(out_a, ref, atol=5e-3, rtol=5e-3))

    # Path B: pass 1 caches bf16 logits, pass 2 skips the second matmul.
    out_b = projection_layer(x, weight_bf16, bias, tm=128, tv=512,
                             cache_logits=True)
    out_b = jax.block_until_ready(out_b)
    assert bool(jnp.allclose(out_b, ref, atol=2e-2, rtol=5e-3))

    # Path C: auto tile / VMEM sizing from pltpu.get_tpu_info().
    out_c = projection_layer(x, weight_bf16, bias)
    out_c = jax.block_until_ready(out_c)
    assert bool(jnp.allclose(out_c, ref, atol=2e-2, rtol=5e-3))

    print("KERNEL_OK")
</pallas_src>

<mosaic_0001>
module attributes {stable_mosaic.version = 11 : i64} {
  func.func @_pass1_kernel(%arg0: i32, %arg1: i32, %arg2: memref<128x128xbf16, #tpu.memory_space<vmem>>, %arg3: memref<128x512xbf16, #tpu.memory_space<vmem>>, %arg4: memref<1x512xf32, #tpu.memory_space<vmem>>, %arg5: memref<128x1xf32, #tpu.memory_space<vmem>>, %arg6: memref<2x128x1xf32, #tpu.memory_space<vmem>>, %arg7: memref<2x128x1xf32, #tpu.memory_space<vmem>>) attributes {dimension_semantics = [#tpu.dimension_semantics<arbitrary>, #tpu.dimension_semantics<arbitrary>], iteration_bounds = array<i64: 2, 2>, scalar_prefetch = 0 : i64, scratch_operands = 2 : i64, tpu.core_type = #tpu.core_type<tc>, window_params = [{transform_indices = @transform_0, window_bounds = array<i64: 128, 128>}, {transform_indices = @transform_1, window_bounds = array<i64: 128, 512>}, {transform_indices = @transform_2, window_bounds = array<i64: 1, 512>}, {transform_indices = @transform_3, window_bounds = array<i64: 128, 1>}]} {
    %c0 = arith.constant 0 : index
    %c0_0 = arith.constant 0 : index
    %0 = vector.load %arg2[%c0, %c0_0] : memref<128x128xbf16, #tpu.memory_space<vmem>>, vector<128x128xbf16>
    %c0_1 = arith.constant 0 : index
    %c0_2 = arith.constant 0 : index
    %1 = vector.load %arg3[%c0_1, %c0_2] : memref<128x512xbf16, #tpu.memory_space<vmem>>, vector<128x512xbf16>
    %cst = arith.constant dense<0.000000e+00> : vector<128x512xf32>
    %2 = tpu.matmul %0, %1, %cst {dimension_numbers = #tpu.dot_dimension_numbers<[1], [0], [0], [1], [0, 0, 1, 1], [], []>} : vector<128x128xbf16>, vector<128x512xbf16>, vector<128x512xf32> -> vector<128x512xf32>
    %c0_3 = arith.constant 0 : index
    %c0_4 = arith.constant 0 : index
    %3 = vector.load %arg4[%c0_3, %c0_4] : memref<1x512xf32, #tpu.memory_space<vmem>>, vector<1x512xf32>
    %4 = vector.broadcast %3 : vector<1x512xf32> to vector<128x512xf32>
    %5 = arith.addf %2, %4 : vector<128x512xf32>
    %6 = tpu.iota {dimensions = array<i32: 1>} : vector<128x512xi32>
    %c512_i32 = arith.constant 512 : i32
    %7 = arith.muli %arg0, %c512_i32 : i32
    %8 = vector.broadcast %7 : i32 to vector<128x512xi32>
    %9 = arith.addi %6, %8 : vector<128x512xi32>
    %c1000_i32 = arith.constant 1000 : i32
    %10 = vector.broadcast %c1000_i32 : i32 to vector<128x512xi32>
    %11 = arith.cmpi slt, %9, %10 : vector<128x512xi32>
    %cst_5 = arith.constant -1.000000e+30 : f32
    %12 = vector.broadcast %cst_5 : f32 to vector<128x512xf32>
    %13 = arith.select %11, %5, %12 : vector<128x512xi1>, vector<128x512xf32>
    %c0_i32 = arith.constant 0 : i32
    %14 = arith.cmpi eq, %arg0, %c0_i32 : i32
    %15 = arith.extui %14 : i1 to i32
    %c0_i32_6 = arith.constant 0 : i32
    %16 = arith.cmpi ne, %15, %c0_i32_6 : i32
    scf.if %16 {
      %cst_19 = arith.constant -1.000000e+30 : f32
      %46 = vector.broadcast %cst_19 : f32 to vector<128x1xf32>
      %47 = arith.index_cast %arg1 : i32 to index
      %c0_20 = arith.constant 0 : index
      %c0_21 = arith.constant 0 : index
      %48 = vector.load %arg6[%47, %c0_20, %c0_21] : memref<2x128x1xf32, #tpu.memory_space<vmem>>, vector<1x128x1xf32>
      %49 = vector.shape_cast %48 : vector<1x128x1xf32> to vector<128x1xf32>
      %50 = vector.shape_cast %46 : vector<128x1xf32> to vector<1x128x1xf32>
      tpu.vector_store %arg6[%47, %c0_20, %c0_21], %50 {strides = array<i32>} : memref<2x128x1xf32, #tpu.memory_space<vmem>>, vector<1x128x1xf32>,
      %cst_22 = arith.constant 0.000000e+00 : f32
      %51 = vector.broadcast %cst_22 : f32 to vector<128x1xf32>
      %52 = arith.index_cast %arg1 : i32 to index
      %c0_23 = arith.constant 0 : index
      %c0_24 = arith.constant 0 : index
      %53 = vector.load %arg7[%52, %c0_23, %c0_24] : memref<2x128x1xf32, #tpu.memory_space<vmem>>, vector<1x128x1xf32>
      %54 = vector.shape_cast %53 : vector<1x128x1xf32> to vector<128x1xf32>
      %55 = vector.shape_cast %51 : vector<128x1xf32> to vector<1x128x1xf32>
      tpu.vector_store %arg7[%52, %c0_23, %c0_24], %55 {strides = array<i32>} : memref<2x128x1xf32, #tpu.memory_space<vmem>>, vector<1x128x1xf32>,
    } else {
    }
    %17 = arith.index_cast %arg1 : i32 to index
    %c0_7 = arith.constant 0 : index
    %c0_8 = arith.constant 0 : index
    %18 = vector.load %arg6[%17, %c0_7, %c0_8] : memref<2x128x1xf32, #tpu.memory_space<vmem>>, vector<1x128x1xf32>
    %19 = vector.shape_cast %18 : vector<1x128x1xf32> to vector<128x1xf32>
    %cst_9 = arith.constant dense<0xFF800000> : vector<128xf32>
    %20 = vector.multi_reduction <maximumf>, %13, %cst_9 [1] : vector<128x512xf32> to vector<128xf32>
    %21 = vector.shape_cast %20 : vector<128xf32> to vector<128x1xf32>
    %22 = arith.maximumf %19, %21 : vector<128x1xf32>
    %23 = arith.index_cast %arg1 : i32 to index
    %c0_10 = arith.constant 0 : index
    %c0_11 = arith.constant 0 : index
    %24 = vector.load %arg7[%23, %c0_10, %c0_11] : memref<2x128x1xf32, #tpu.memory_space<vmem>>, vector<1x128x1xf32>
    %25 = vector.shape_cast %24 : vector<1x128x1xf32> to vector<128x1xf32>
    %26 = arith.subf %19, %22 : vector<128x1xf32>
    %27 = math.exp %26 : vector<128x1xf32>
    %28 = arith.mulf %25, %27 : vector<128x1xf32>
    %29 = vector.broadcast %22 : vector<128x1xf32> to vector<128x512xf32>
    %30 = arith.subf %13, %29 : vector<128x512xf32>
    %31 = math.exp %30 : vector<128x512xf32>
    %cst_12 = arith.constant dense<0.000000e+00> : vector<128xf32>
    %32 = vector.multi_reduction <add>, %31, %cst_12 [1] : vector<128x512xf32> to vector<128xf32>
    %33 = vector.shape_cast %32 : vector<128xf32> to vector<128x1xf32>
    %34 = arith.addf %28, %33 : vector<128x1xf32>
    %35 = arith.index_cast %arg1 : i32 to index
    %c0_13 = arith.constant 0 : index
    %c0_14 = arith.constant 0 : index
    %36 = vector.load %arg6[%35, %c0_13, %c0_14] : memref<2x128x1xf32, #tpu.memory_space<vmem>>, vector<1x128x1xf32>
    %37 = vector.shape_cast %36 : vector<1x128x1xf32> to vector<128x1xf32>
    %38 = vector.shape_cast %22 : vector<128x1xf32> to vector<1x128x1xf32>
    tpu.vector_store %arg6[%35, %c0_13, %c0_14], %38 {strides = array<i32>} : memref<2x128x1xf32, #tpu.memory_space<vmem>>, vector<1x128x1xf32>,
    %39 = arith.index_cast %arg1 : i32 to index
    %c0_15 = arith.constant 0 : index
    %c0_16 = arith.constant 0 : index
    %40 = vector.load %arg7[%39, %c0_15, %c0_16] : memref<2x128x1xf32, #tpu.memory_space<vmem>>, vector<1x128x1xf32>
    %41 = vector.shape_cast %40 : vector<1x128x1xf32> to vector<128x1xf32>
    %42 = vector.shape_cast %34 : vector<128x1xf32> to vector<1x128x1xf32>
    tpu.vector_store %arg7[%39, %c0_15, %c0_16], %42 {strides = array<i32>} : memref<2x128x1xf32, #tpu.memory_space<vmem>>, vector<1x128x1xf32>,
    %43 = math.log %34 : vector<128x1xf32>
    %44 = arith.addf %22, %43 : vector<128x1xf32>
    %c0_17 = arith.constant 0 : index
    %c0_18 = arith.constant 0 : index
    %45 = vector.load %arg5[%c0_17, %c0_18] : memref<128x1xf32, #tpu.memory_space<vmem>>, vector<128x1xf32>
    tpu.vector_store %arg5[%c0_17, %c0_18], %44 {strides = array<i32>} : memref<128x1xf32, #tpu.memory_space<vmem>>, vector<128x1xf32>,
    return
  }
  func.func @transform_0(%arg0: i32, %arg1: i32) -> (i32, i32) {
    %c0_i32 = arith.constant 0 : i32
    %c0_i32_0 = arith.constant 0 : i32
    return %arg1, %c0_i32 : i32, i32
  }
  func.func @transform_1(%arg0: i32, %arg1: i32) -> (i32, i32) {
    %c0_i32 = arith.constant 0 : i32
    %c0_i32_0 = arith.constant 0 : i32
    return %c0_i32, %arg0 : i32, i32
  }
  func.func @transform_2(%arg0: i32, %arg1: i32) -> (i32, i32) {
    %c0_i32 = arith.constant 0 : i32
    %c0_i32_0 = arith.constant 0 : i32
    return %c0_i32, %arg0 : i32, i32
  }
  func.func @transform_3(%arg0: i32, %arg1: i32) -> (i32, i32) {
    %c0_i32 = arith.constant 0 : i32
    %c0_i32_0 = arith.constant 0 : i32
    return %arg1, %c0_i32 : i32, i32
  }
}

</mosaic_0001>

<bundles_post_ra>
// kernel: tpu_custom_call.1
= control target key start
LH: loop header
LB: loop body
LE: loop exit
PB: predicated region body
PF: predicated region fallthrough
CT: control target
= control target key end

     0   :  { %s2558_s12 = smov 0   ;;  %s2560_s13 = smov 0   ;;  %s3795_s0 = inlined_call_operand.vmem [shape: bf16[144,128], index: 0, kind: input, shape index: {}]   ;;  %s3796_s1 = inlined_call_operand.vmem [shape: bf16[128,1000], index: 1, kind: input, shape index: {}]   ;;  %s3797_s2 = inlined_call_operand.vmem [shape: f32[1,1000], index: 2, kind: input, shape index: {}]   ;;  %s3798_s3 = inlined_call_operand.vmem [shape: f32[144,1], index: 3, kind: output, shape index: {}]  }
   0x1   :  { %s2562_s14 = smov 0   ;;  %s2564_s15 = smov 0  }
   0x2   :  { %s2566_s16 = smov 0   ;;  %s2568_s17 = smov 0  }
   0x3   :  { %s2570_s18 = smov 0   ;;  %s2572_s19 = smov 0  }
   0x4   :  { %s2574_s20 = smov 0  }
   0x5 LB: > { %s1932_s21 = sadd.s32 4294967295, %s2501_s20   ;;  %s22_s22 = sadd.s32 1, %s2493_s18  ;;  %s2501_s20 = sphi %s2574_s20, %s13_s20   ;;  %s2497_s19 = sphi %s2572_s19, %s3969_s19   ;;  %s2493_s18 = sphi %s2570_s18, %s3968_s18   ;;  %s2489_s17 = sphi %s2568_s17, %s3967_s17   ;;  %s2485_s16 = sphi %s2566_s16, %s3966_s16   ;;  %s2481_s15 = sphi %s2564_s15, %s3965_s15   ;;  %s2477_s14 = sphi %s2562_s14, %s3964_s14   ;;  %s2473_s13 = sphi %s2560_s13, %s3963_s13   ;;  %s2469_s12 = sphi %s2558_s12, %s3962_s12  }
   0x6   : > { %p23_p0 = scmp.ge.s32.totalorder %s22_s22, 2  ;;  %s25_s23 = sadd.s32 1, %s2497_s19 }
   0x7   : > { %s58_s24 = sadd.s32 1, %s2481_s15  ;;  %p65_p1 = scmp.ne.s32.totalorder %s2481_s15, %s2477_s14 }
   0x8   : > { %s3971_s22 = smov (%p23_p0, %s22_s22), 0  ;;  %s3973_s23 = smov (!%p23_p0, %s25_s23), %s2497_s19 }
   0x9   : > { %p66_p2 = scmp.eq.s32.totalorder %s2501_s20, 0  ;;  %s107_s25 = ssub.s32 %s2493_s18, %s3971_s22 }
   0xa   : > { %p27_p3 = scmp.ge.s32.totalorder %s3973_s23, 2  ;;  %p108_p4 = scmp.eq.s32.totalorder %s107_s25, 0 }
   0xb   : > { %p67_p5 = por %p66_p2, %p65_p1  ;;  %s110_s26 = sadd.s32 1, %s2473_s13 }
   0xc   : > { %s3975_s23 = smov (%p27_p3, %s3973_s23), 0  ;;  %p120_p6 = scmp.ne.s32.totalorder %s2473_s13, %s2469_s12 }
   0xd   : > { %s2619_s27 = scalar_select %p108_p4, %s2473_s13, %s110_s26  }
   0xe   : > { %s55_s28 = ssub.s32 %s2497_s19, %s3975_s23  ;;  %p121_p8 = scmp.eq.s32.totalorder %s1932_s21, 3 }
   0xf   : > { %p56_p7 = scmp.eq.s32.totalorder %s55_s28, 0  ;;  %p1935_p10 = scmp.ge.s32.totalorder %s2501_s20, 4 }
  0x10   : > { %p2628_p9 = por %p121_p8, %p120_p6 }
  0x11   : > { %s2626_s29 = scalar_select %p56_p7, %s2481_s15, %s58_s24  }
  0x12   : > { %143 = sbr.rel (%p1935_p10) target bundleno = 43 (0x2b), region = 16 }
  0x17   : > { %163 = sbr.rel (!%p67_p5) target bundleno = 43 (0x2b), region = 24  ;;  %s165_s4 = sand.u32 (%p67_p5), 1, %s2481_s15  }
  0x18   : > { %s2006_s5 = sshll.u32 (%p67_p5), %s2497_s19, 4  ;;  %s1936_s6 = sshll.u32 (%p67_p5), %s165_s4, 8 }
  0x19   : > { %s2638_s9 = scalar_lea.vmem (%p67_p5), %s3796_s1, %s2006_s5  ;;  %s2643_s10 = scalar_lea.vmem (%p67_p5), [#allocation4], %s1936_s6 }
  0x1a   : > { %v183_v0 = vld [vmem:[%s2638_s9] sm:$0xff] (%p67_p5)  ;;  %v185_v1 = vld [vmem:[%s2638_s9 + $0x8] sm:$0xff] (%p67_p5) }
  0x1b   : > { %v187_v2 = vld [vmem:[%s2638_s9 + $0x20] sm:$0xff] (%p67_p5)  ;;  %184 = vst [vmem:[%s2643_s10] sm:$0xff] (%p67_p5), %v183_v0  ;;  %186 = vst [vmem:[%s2643_s10 + $0x8] sm:$0xff] (%p67_p5), %v185_v1  ;;  %v189_v3 = vld [vmem:[%s2638_s9 + $0x28] sm:$0xff] (%p67_p5) }
  0x1c   : > { %188 = vst [vmem:[%s2643_s10 + $0x10] sm:$0xff] %v187_v2  ;;  %v191_v4 = vld [vmem:[%s2638_s9 + $0x40] sm:$0xff]  ;;  %v193_v5 = vld [vmem:[%s2638_s9 + $0x48] sm:$0xff]  ;;  %190 = vst [vmem:[%s2643_s10 + $0x18] sm:$0xff] %v189_v3 }
  0x1d   : > { %192 = vst [vmem:[%s2643_s10 + $0x20] sm:$0xff] %v191_v4  ;;  %194 = vst [vmem:[%s2643_s10 + $0x28] sm:$0xff] %v193_v5  ;;  %v195_v6 = vld [vmem:[%s2638_s9 + $0x60] sm:$0xff]  ;;  %v197_v7 = vld [vmem:[%s2638_s9 + $0x68] sm:$0xff] }
  0x1e   : > { %v199_v8 = vld [vmem:[%s2638_s9 + $0x80] sm:$0xff]  ;;  %196 = vst [vmem:[%s2643_s10 + $0x30] sm:$0xff] %v195_v6  ;;  %198 = vst [vmem:[%s2643_s10 + $0x38] sm:$0xff] %v197_v7  ;;  %v201_v9 = vld [vmem:[%s2638_s9 + $0x88] sm:$0xff] }
  0x1f   : > { %200 = vst [vmem:[%s2643_s10 + $0x40] sm:$0xff] %v199_v8  ;;  %v203_v10 = vld [vmem:[%s2638_s9 + $0xa0] sm:$0xff]  ;;  %v205_v11 = vld [vmem:[%s2638_s9 + $0xa8] sm:$0xff]  ;;  %202 = vst [vmem:[%s2643_s10 + $0x48] sm:$0xff] %v201_v9 }
  0x20   : > { %204 = vst [vmem:[%s2643_s10 + $0x50] sm:$0xff] %v203_v10  ;;  %206 = vst [vmem:[%s2643_s10 + $0x58] sm:$0xff] %v205_v11  ;;  %v207_v12 = vld [vmem:[%s2638_s9 + $0xc0] sm:$0xff]  ;;  %v209_v13 = vld [vmem:[%s2638_s9 + $0xc8] sm:$0xff] }
  0x21   : > { %v211_v14 = vld [vmem:[%s2638_s9 + $0xe0] sm:$0xff]  ;;  %208 = vst [vmem:[%s2643_s10 + $0x60] sm:$0xff] %v207_v12  ;;  %210 = vst [vmem:[%s2643_s10 + $0x68] sm:$0xff] %v209_v13  ;;  %v213_v15 = vld [vmem:[%s2638_s9 + $0xe8] sm:$0xff] }
  0x22   : > { %212 = vst [vmem:[%s2643_s10 + $0x70] sm:$0xff] %v211_v14  ;;  %v215_v16 = vld [vmem:[%s2638_s9 + $0x100] sm:$0xff]  ;;  %v217_v17 = vld [vmem:[%s2638_s9 + $0x108] sm:$0xff]  ;;  %214 = vst [vmem:[%s2643_s10 + $0x78] sm:$0xff] %v213_v15 }
  0x23   : > { %216 = vst [vmem:[%s2643_s10 + $0x80] sm:$0xff] %v215_v16  ;;  %218 = vst [vmem:[%s2643_s10 + $0x88] sm:$0xff] %v217_v17  ;;  %v219_v18 = vld [vmem:[%s2638_s9 + $0x120] sm:$0xff]  ;;  %v221_v19 = vld [vmem:[%s2638_s9 + $0x128] sm:$0xff] }
  0x24   : > { %v223_v20 = vld [vmem:[%s2638_s9 + $0x140] sm:$0xff]  ;;  %220 = vst [vmem:[%s2643_s10 + $0x90] sm:$0xff] %v219_v18  ;;  %222 = vst [vmem:[%s2643_s10 + $0x98] sm:$0xff] %v221_v19  ;;  %v225_v21 = vld [vmem:[%s2638_s9 + $0x148] sm:$0xff] }
  0x25   : > { %224 = vst [vmem:[%s2643_s10 + $0xa0] sm:$0xff] %v223_v20  ;;  %v227_v22 = vld [vmem:[%s2638_s9 + $0x160] sm:$0xff]  ;;  %v229_v23 = vld [vmem:[%s2638_s9 + $0x168] sm:$0xff]  ;;  %226 = vst [vmem:[%s2643_s10 + $0xa8] sm:$0xff] %v225_v21 }
  0x26   : > { %228 = vst [vmem:[%s2643_s10 + $0xb0] sm:$0xff] %v227_v22  ;;  %230 = vst [vmem:[%s2643_s10 + $0xb8] sm:$0xff] %v229_v23  ;;  %v231_v24 = vld [vmem:[%s2638_s9 + $0x180] sm:$0xff]  ;;  %v233_v25 = vld [vmem:[%s2638_s9 + $0x188] sm:$0xff] }
  0x27   : > { %v235_v26 = vld [vmem:[%s2638_s9 + $0x1a0] sm:$0xff]  ;;  %232 = vst [vmem:[%s2643_s10 + $0xc0] sm:$0xff] %v231_v24  ;;  %234 = vst [vmem:[%s2643_s10 + $0xc8] sm:$0xff] %v233_v25  ;;  %v237_v27 = vld [vmem:[%s2638_s9 + $0x1a8] sm:$0xff] }
  0x28   : > { %236 = vst [vmem:[%s2643_s10 + $0xd0] sm:$0xff] %v235_v26  ;;  %v239_v28 = vld [vmem:[%s2638_s9 + $0x1c0] sm:$0xff]  ;;  %v241_v29 = vld [vmem:[%s2638_s9 + $0x1c8] sm:$0xff]  ;;  %238 = vst [vmem:[%s2643_s10 + $0xd8] sm:$0xff] %v237_v27 }
  0x29   : > { %240 = vst [vmem:[%s2643_s10 + $0xe0] sm:$0xff] %v239_v28  ;;  %242 = vst [vmem:[%s2643_s10 + $0xe8] sm:$0xff] %v241_v29  ;;  %v243_v30 = vld [vmem:[%s2638_s9 + $0x1e0] sm:$0xff]  ;;  %v245_v31 = vld [vmem:[%s2638_s9 + $0x1e8] sm:$0xff] }
  0x2a   : > { %244 = vst [vmem:[%s2643_s10 + $0xf0] sm:$0xff] %v243_v30  ;;  %246 = vst [vmem:[%s2643_s10 + $0xf8] sm:$0xff] %v245_v31 }
  0x2b PF: > { %p1939_p11 = scmp.ge.s32.totalorder %s2501_s20, 1  ;;  %p259_p12 = scmp.lt.s32.totalorder %s2501_s20, 5 }
  0x2d   : > { %p260_p13 = pnand %p1939_p11, %p259_p12 }
  0x2f   : > { %263 = sbr.rel (%p260_p13) target bundleno = 919 (0x397), region = 51 }
  0x34   : > { %s266_s11 = sand.u32 1, %s2477_s14   ;;  %s298_s21 = sand.u32 1, %s2469_s12   ;;  %v3799_v32 = vmov 0   ;;  %v377_v9 = vlaneseq }
  0x35   : > { %s1940_s24 = sshll.u32 %s266_s11, 8  ;;  %s2710_s25 = sshll.u32 %s298_s21, 7  ;;  %637 = vmatprep.mubr.bf16.mxu0 %v3799_v32  ;;  %750 = vmatprep.mubr.bf16.mxu1 %v3799_v32 }
  0x36   : > { %s2714_s26 = scalar_lea.vmem [#allocation4], %s1940_s24  ;;  %s2726_s12 = sshll.u32 %s2485_s16, 4  ;;  %v832_v10 = vand.u32 127, %v377_v9  ;;  %v378_v11 = vshrl.u32 %v377_v9, 7 }
  0x37   : > { %v2149_v33 = vld [vmem:[%s2714_s26 + $0xe4] ss:$16 sps:$4 sm:$0xff]   ;;  %v2151_v34 = vld [vmem:[%s2714_s26 + $0xec] ss:$16 sps:$4 sm:$0xff]   ;;  %v2153_v35 = vld [vmem:[%s2714_s26 + $0xe0] ss:$16 sps:$4 sm:$0xff]  }
  0x38   : > { %605 = vmatprep.subr.bf16.mxu0 %v2149_v33  ;;  %v2154_v36 = vld [vmem:[%s2714_s26 + $0xe8] ss:$16 sps:$4 sm:$0xff]   ;;  %718 = vmatprep.subr.bf16.mxu1 %v2151_v34  ;;  %v2155_v37 = vld [vmem:[%s2714_s26 + $0xc4] ss:$16 sps:$4 sm:$0xff]   ;;  %v2157_v38 = vld [vmem:[%s2714_s26 + $0xcc] ss:$16 sps:$4 sm:$0xff]  }
  0x39   : > { %606 = vmatpush1.bf16.msra.mxu0 %v2153_v35  ;;  %719 = vmatpush1.bf16.msra.mxu1 %v2154_v36  ;;  %v2159_v39 = vld [vmem:[%s2714_s26 + $0xc0] ss:$16 sps:$4 sm:$0xff]   ;;  %v2160_v40 = vld [vmem:[%s2714_s26 + $0xc8] ss:$16 sps:$4 sm:$0xff]   ;;  %v2161_v41 = vld [vmem:[%s2714_s26 + $0xa4] ss:$16 sps:$4 sm:$0xff]  }
  0x3a   : > { %607 = vmatprep.subr.bf16.mxu0 %v2155_v37  ;;  %720 = vmatprep.subr.bf16.mxu1 %v2157_v38  ;;  %v2163_v42 = vld [vmem:[%s2714_s26 + $0xac] ss:$16 sps:$4 sm:$0xff]   ;;  %v2165_v43 = vld [vmem:[%s2714_s26 + $0xa0] ss:$16 sps:$4 sm:$0xff]   ;;  %v2166_v44 = vld [vmem:[%s2714_s26 + $0xa8] ss:$16 sps:$4 sm:$0xff]  }
  0x3b   : > { %v2167_v45 = vld [vmem:[%s2714_s26 + $0x84] ss:$16 sps:$4 sm:$0xff]   ;;  %v2169_v46 = vld [vmem:[%s2714_s26 + $0x8c] ss:$16 sps:$4 sm:$0xff]   ;;  %p306_p0 = scmp.lt.s32.totalorder %s2726_s12, 17  ;;  %s1944_s7 = sshll.u32 %s2489_s17, 2 }
  0x3c   : > { %v2171_v47 = vld [vmem:[%s2714_s26 + $0x80] ss:$16 sps:$4 sm:$0xff]   ;;  %v2172_v48 = vld [vmem:[%s2714_s26 + $0x88] ss:$16 sps:$4 sm:$0xff]   ;;  %v2173_v49 = vld [vmem:[%s2714_s26 + $0x64] ss:$16 sps:$4 sm:$0xff]  }
  0x3d   : > { %608 = vmatpush1.bf16.msra.mxu0 %v2159_v39  ;;  %721 = vmatpush1.bf16.msra.mxu1 %v2160_v40  ;;  %v2175_v50 = vld [vmem:[%s2714_s26 + $0x6c] ss:$16 sps:$4 sm:$0xff]   ;;  %s307_s14 = scalar_select %p306_p0, %s2726_s12, 17  ;;  %v2177_v51 = vld [vmem:[%s2714_s26 + $0x60] ss:$16 sps:$4 sm:$0xff]   ;;  %v834_v12 = vadd.s32 256, %v832_v10 }
  0x3e   : > { %609 = vmatprep.subr.bf16.mxu0 %v2161_v41  ;;  %722 = vmatprep.subr.bf16.mxu1 %v2163_v42  ;;  %v2178_v52 = vld [vmem:[%s2714_s26 + $0x68] ss:$16 sps:$4 sm:$0xff]   ;;  %v2179_v53 = vld [vmem:[%s2714_s26 + $0x44] ss:$16 sps:$4 sm:$0xff]   ;;  %v2181_v54 = vld [vmem:[%s2714_s26 + $0x4c] ss:$16 sps:$4 sm:$0xff]  }
  0x3f   : > { %s1943_s28 = sshll.u32 %s307_s14, 2  ;;  %v2183_v55 = vld [vmem:[%s2714_s26 + $0x40] ss:$16 sps:$4 sm:$0xff]   ;;  %v2184_v56 = vld [vmem:[%s2714_s26 + $0x48] ss:$16 sps:$4 sm:$0xff]   ;;  %p317_p1 = scmp.lt.s32.totalorder %s1944_s7, 7 }
  0x40   : > { %v2185_v57 = vld [vmem:[%s2714_s26 + $0x24] ss:$16 sps:$4 sm:$0xff]   ;;  %s2749_s6 = scalar_lea.vmem %s3795_s0, %s1943_s28  ;;  %v2187_v58 = vld [vmem:[%s2714_s26 + $0x2c] ss:$16 sps:$4 sm:$0xff]   ;;  %v2189_v59 = vld [vmem:[%s2714_s26 + $0x20] ss:$16 sps:$4 sm:$0xff]  }
  0x41   : > { %610 = vmatpush1.bf16.msra.mxu0 %v2165_v43  ;;  %723 = vmatpush1.bf16.msra.mxu1 %v2166_v44  ;;  %v2190_v60 = vld [vmem:[%s2714_s26 + $0x28] ss:$16 sps:$4 sm:$0xff]   ;;  %v2191_v61 = vld [vmem:[%s2714_s26 + $0x4] ss:$16 sps:$4 sm:$0xff]   ;;  %v2193_v62 = vld [vmem:[%s2714_s26 + $0xc] ss:$16 sps:$4 sm:$0xff]  }
  0x42   : > { %611 = vmatprep.subr.bf16.mxu0 %v2167_v45  ;;  %724 = vmatprep.subr.bf16.mxu1 %v2169_v46  ;;  %v2195_v63 = vld [vmem:[%s2714_s26] ss:$16 sps:$4 sm:$0xff]   ;;  %v2196_v0 = vld [vmem:[%s2714_s26 + $0x8] ss:$16 sps:$4 sm:$0xff]   ;;  %s3977_s7 = smov (!%p317_p1, %s1944_s7), 7  ;;  %s1985_s8 = sshll.u32 %s2489_s17, 9 }
  0x43   : > { %v2197_v1 = vld [vmem:[%s2749_s6] sm:$0xff]   ;;  %v2198_v2 = vld [vmem:[%s2749_s6 + $0x8] sm:$0xff]   ;;  %v2199_v3 = vld [vmem:[%s2749_s6 + $0x10] sm:$0xff]   ;;  %s319_s11 = scalar_lea.vmem %s3797_s2, %s3977_s7  ;;  %v379_v13 = vsub.s32 0, %v378_v11  ;;  %v837_v14 = vstv %s1985_s8  ;;  %v387_v15 = vsub.s32 2, %v378_v11  ;;  %v833_v17 = vadd.s32 128, %v832_v10 }
  0x44   : > { %v2200_v4 = vld [vmem:[%s2749_s6 + $0x18] sm:$0xff]   ;;  %v2201_v5 = vld [vmem:[%s2749_s6 + $0x20] sm:$0xff]   ;;  %v2202_v6 = vld [vmem:[%s2749_s6 + $0x28] sm:$0xff]   ;;  %v835_v18 = vadd.s32 384, %v832_v10  ;;  %v383_v19 = vsub.s32 1, %v378_v11  ;;  %v391_v20 = vsub.s32 3, %v378_v11  ;;  %v2785_v21 = vadd.s32 %v837_v14, %v832_v10 }
  0x45   : > { %612 = vmatpush1.bf16.msra.mxu0 %v2171_v47  ;;  %725 = vmatpush1.bf16.msra.mxu1 %v2172_v48  ;;  %v2203_v7 = vld [vmem:[%s2749_s6 + $0x30] sm:$0xff]   ;;  %v2204_v8 = vld [vmem:[%s2749_s6 + $0x38] sm:$0xff]   ;;  %v375_v16 = vld [vmem:[%s319_s11] sm:$0xf]  ;;  %v2787_v22 = vadd.s32 %v837_v14, %v834_v12  ;;  %v2793_v25 = vadd.s32 %v837_v14, %v833_v17  ;;  %s3126_s21 = scalar_lea.vmem [#allocation5], %s2710_s25   ;;  %p1986_p2 = scmp.ne.s32.totalorder %s2489_s17, 0 }
  0x46   : > { %613 = vmatprep.subr.bf16.mxu0 %v2173_v49  ;;  %726 = vmatprep.subr.bf16.mxu1 %v2175_v50  ;;  %v2789_v23 = vrot.slane %v375_v16, %v379_v13  ;;  %v2791_v24 = vrot.slane %v375_v16, %v387_v15  ;;  %v2795_v26 = vadd.s32 %v837_v14, %v835_v18  ;;  %vm842_vm0 = vcmp.lt.s32.totalorder %v2785_v21, 1000  ;;  %s1987_s24 = sshll.u32 (!%p1986_p2), %s2485_s16, 7 }
  0x47   : > { %v2797_v27 = vrot.slane %v375_v16, %v383_v19  ;;  %v2799_v28 = vrot.slane %v375_v16, %v391_v20  ;;  %vm844_vm1 = vcmp.lt.s32.totalorder %v2787_v22, 1000  ;;  %vm843_vm2 = vcmp.lt.s32.totalorder %v2793_v25, 1000  ;;  %s915_s26 = scalar_lea.vmem (!%p1986_p2), [#allocation2], %s1987_s24  ;;  %s933_s17 = scalar_lea.vmem (!%p1986_p2), [#allocation3], %s1987_s24 }
  0x48   : > { %vm845_vm3 = vcmp.lt.s32.totalorder %v2795_v26, 1000 }
  0x49   : > { %614 = vmatpush1.bf16.msra.mxu0 %v2177_v51  ;;  %727 = vmatpush1.bf16.msra.mxu1 %v2178_v52 }
  0x4a   : > { %615 = vmatprep.subr.bf16.mxu0 %v2179_v53  ;;  %728 = vmatprep.subr.bf16.mxu1 %v2181_v54 }
  0x4d   : > { %616 = vmatpush1.bf16.msra.mxu0 %v2183_v55  ;;  %729 = vmatpush1.bf16.msra.mxu1 %v2184_v56 }
  0x4e   : > { %617 = vmatprep.subr.bf16.mxu0 %v2185_v57  ;;  %730 = vmatprep.subr.bf16.mxu1 %v2187_v58 }
  0x51   : > { %618 = vmatpush1.bf16.msra.mxu0 %v2189_v59  ;;  %731 = vmatpush1.bf16.msra.mxu1 %v2190_v60 }
  0x52   : > { %619 = vmatprep.subr.bf16.mxu0 %v2191_v61  ;;  %732 = vmatprep.subr.bf16.mxu1 %v2193_v62 }
  0x55   : > { %620 = vmatpush1.bf16.msra.mxu0 %v2195_v63  ;;  %733 = vmatpush1.bf16.msra.mxu1 %v2196_v0 }
  0x58   : > { %638 = vmatmul.mubr.bf16.vlgmr.msra.gmra.mxu0 %v2197_v1  ;;  %751 = vmatmul.mubr.bf16.vlgmr.msra.gmra.mxu1 %v2197_v1 }
  0x59   : > { %647 = vmatprep.mubr.bf16.mxu0 %v3799_v32  ;;  %760 = vmatprep.mubr.bf16.mxu1 %v3799_v32 }
  0x60   : > { %648 = vmatmul.mubr.bf16.gmra.mxu0 %v2198_v2  ;;  %761 = vmatmul.mubr.bf16.gmra.mxu1 %v2198_v2 }
  0x61   : > { %657 = vmatprep.mubr.bf16.mxu0 %v3799_v32  ;;  %770 = vmatprep.mubr.bf16.mxu1 %v3799_v32 }
  0x68   : > { %658 = vmatmul.mubr.bf16.gmra.mxu0 %v2199_v3  ;;  %771 = vmatmul.mubr.bf16.gmra.mxu1 %v2199_v3 }
  0x69   : > { %667 = vmatprep.mubr.bf16.mxu0 %v3799_v32  ;;  %780 = vmatprep.mubr.bf16.mxu1 %v3799_v32 }
  0x70   : > { %668 = vmatmul.mubr.bf16.gmra.mxu0 %v2200_v4  ;;  %781 = vmatmul.mubr.bf16.gmra.mxu1 %v2200_v4 }
  0x71   : > { %677 = vmatprep.mubr.bf16.mxu0 %v3799_v32  ;;  %790 = vmatprep.mubr.bf16.mxu1 %v3799_v32 }
  0x78   : > { %678 = vmatmul.mubr.bf16.gmra.mxu0 %v2201_v5  ;;  %791 = vmatmul.mubr.bf16.gmra.mxu1 %v2201_v5 }
  0x79   : > { %687 = vmatprep.mubr.bf16.mxu0 %v3799_v32  ;;  %800 = vmatprep.mubr.bf16.mxu1 %v3799_v32 }
  0x80   : > { %688 = vmatmul.mubr.bf16.gmra.mxu0 %v2202_v6  ;;  %801 = vmatmul.mubr.bf16.gmra.mxu1 %v2202_v6 }
  0x81   : > { %697 = vmatprep.mubr.bf16.mxu0 %v3799_v32  ;;  %810 = vmatprep.mubr.bf16.mxu1 %v3799_v32 }
  0x88   : > { %698 = vmatmul.mubr.bf16.gmra.mxu0 %v2203_v7  ;;  %811 = vmatmul.mubr.bf16.gmra.mxu1 %v2203_v7 }
  0x89   : > { %707 = vmatprep.mubr.bf16.mxu0 %v3799_v32  ;;  %820 = vmatprep.mubr.bf16.mxu1 %v3799_v32 }
  0x90   : > { %708 = vmatmul.mubr.bf16.gmra.mxu0 %v2204_v8  ;;  %821 = vmatmul.mubr.bf16.gmra.mxu1 %v2204_v8 }
 0x118   : > { %v639_v29 = vpop.f32.mrf.mxu0  ;;  %v752_v30 = vpop.f32.mrf.mxu1 }
 0x119   : > { %v640_v31 = vadd.f32 %v639_v29, %v2789_v23  ;;  %v753_v33 = vadd.f32 %v752_v30, %v2791_v24 }
 0x11a   : > { %v641_v34 = vpop.f32.mrf.mxu0  ;;  %v754_v35 = vpop.f32.mrf.mxu1 }
 0x11b   : > { %v2809_v36 = vsel %vm842_vm0, %v640_v31, -1e+30  ;;  %v2813_v37 = vsel %vm844_vm1, %v753_v33, -1e+30  ;;  %v642_v38 = vadd.f32 %v641_v34, %v2797_v27  ;;  %v755_v39 = vadd.f32 %v754_v35, %v2799_v28 }
 0x11c   : > { %v643_v40 = vpop.f32.mrf.mxu0  ;;  %v756_v41 = vpop.f32.mrf.mxu1 }
 0x11d   : > { %v2819_v42 = vsel %vm843_vm2, %v642_v38, -1e+30  ;;  %v2823_v43 = vsel %vm845_vm3, %v755_v39, -1e+30  ;;  %v644_v44 = vadd.f32 %v643_v40, %v2789_v23  ;;  %v757_v45 = vadd.f32 %v756_v41, %v2791_v24 }
 0x11e   : > { %v645_v46 = vpop.f32.mrf.mxu0  ;;  %v758_v47 = vpop.f32.mrf.mxu1 }
 0x11f   : > { %v2829_v48 = vsel %vm842_vm0, %v644_v44, -1e+30  ;;  %v2833_v49 = vsel %vm844_vm1, %v757_v45, -1e+30  ;;  %v646_v50 = vadd.f32 %v645_v46, %v2797_v27  ;;  %v759_v51 = vadd.f32 %v758_v47, %v2799_v28 }
 0x120   : > { %v649_v52 = vpop.f32.mrf.mxu0  ;;  %v762_v53 = vpop.f32.mrf.mxu1 }
 0x121   : > { %v2839_v54 = vsel %vm843_vm2, %v646_v50, -1e+30  ;;  %v2843_v55 = vsel %vm845_vm3, %v759_v51, -1e+30  ;;  %v650_v56 = vadd.f32 %v649_v52, %v2789_v23  ;;  %v763_v57 = vadd.f32 %v762_v53, %v2791_v24 }
 0x122   : > { %v651_v58 = vpop.f32.mrf.mxu0  ;;  %v764_v59 = vpop.f32.mrf.mxu1 }
 0x123   : > { %v2849_v60 = vsel %vm842_vm0, %v650_v56, -1e+30  ;;  %v2853_v61 = vsel %vm844_vm1, %v763_v57, -1e+30  ;;  %v652_v62 = vadd.f32 %v651_v58, %v2797_v27  ;;  %v765_v63 = vadd.f32 %v764_v59, %v2799_v28 }
 0x124   : > { %v653_v0 = vpop.f32.mrf.mxu0  ;;  %v766_v1 = vpop.f32.mrf.mxu1 }
 0x125   : > { %v2859_v2 = vsel %vm843_vm2, %v652_v62, -1e+30  ;;  %v2863_v3 = vsel %vm845_vm3, %v765_v63, -1e+30  ;;  %v654_v4 = vadd.f32 %v653_v0, %v2789_v23  ;;  %v767_v5 = vadd.f32 %v766_v1, %v2791_v24 }
 0x126   : > { %v655_v6 = vpop.f32.mrf.mxu0  ;;  %v768_v7 = vpop.f32.mrf.mxu1 }
 0x127   : > { %v2869_v8 = vsel %vm842_vm0, %v654_v4, -1e+30  ;;  %v2873_v9 = vsel %vm844_vm1, %v767_v5, -1e+30  ;;  %v656_v10 = vadd.f32 %v655_v6, %v2797_v27  ;;  %v769_v11 = vadd.f32 %v768_v7, %v2799_v28 }
 0x128   : > { %v659_v12 = vpop.f32.mrf.mxu0  ;;  %v772_v13 = vpop.f32.mrf.mxu1 }
 0x129   : > { %v2879_v14 = vsel %vm843_vm2, %v656_v10, -1e+30  ;;  %v2883_v15 = vsel %vm845_vm3, %v769_v11, -1e+30  ;;  %v660_v16 = vadd.f32 %v659_v12, %v2789_v23  ;;  %v773_v17 = vadd.f32 %v772_v13, %v2791_v24 }
 0x12a   : > { %v661_v18 = vpop.f32.mrf.mxu0  ;;  %v774_v19 = vpop.f32.mrf.mxu1 }
 0x12b   : > { %v2889_v20 = vsel %vm842_vm0, %v660_v16, -1e+30  ;;  %v2893_v29 = vsel %vm844_vm1, %v773_v17, -1e+30  ;;  %v662_v30 = vadd.f32 %v661_v18, %v2797_v27  ;;  %v775_v31 = vadd.f32 %v774_v19, %v2799_v28 }
 0x12c   : > { %v663_v33 = vpop.f32.mrf.mxu0  ;;  %v776_v34 = vpop.f32.mrf.mxu1 }
 0x12d   : > { %v2899_v35 = vsel %vm843_vm2, %v662_v30, -1e+30  ;;  %v2903_v38 = vsel %vm845_vm3, %v775_v31, -1e+30  ;;  %v664_v39 = vadd.f32 %v663_v33, %v2789_v23  ;;  %v777_v40 = vadd.f32 %v776_v34, %v2791_v24 }
 0x12e   : > { %v665_v41 = vpop.f32.mrf.mxu0  ;;  %v778_v44 = vpop.f32.mrf.mxu1 }
 0x12f   : > { %v2909_v45 = vsel %vm842_vm0, %v664_v39, -1e+30  ;;  %v2913_v46 = vsel %vm844_vm1, %v777_v40, -1e+30  ;;  %v666_v47 = vadd.f32 %v665_v41, %v2797_v27  ;;  %v779_v50 = vadd.f32 %v778_v44, %v2799_v28 }
 0x130   : > { %v669_v51 = vpop.f32.mrf.mxu0  ;;  %v782_v52 = vpop.f32.mrf.mxu1 }
 0x131   : > { %v2919_v53 = vsel %vm843_vm2, %v666_v47, -1e+30  ;;  %v2923_v56 = vsel %vm845_vm3, %v779_v50, -1e+30  ;;  %v670_v57 = vadd.f32 %v669_v51, %v2789_v23  ;;  %v783_v58 = vadd.f32 %v782_v52, %v2791_v24 }
 0x132   : > { %3846 = vst [vmem:[#allocation6_spill] sm:$0xff] %v2919_v53  ;;  %v671_v59 = vpop.f32.mrf.mxu0  ;;  %v784_v62 = vpop.f32.mrf.mxu1 }
 0x133   : > { %v2929_v63 = vsel %vm842_vm0, %v670_v57, -1e+30  ;;  %v2933_v0 = vsel %vm844_vm1, %v783_v58, -1e+30  ;;  %v672_v1 = vadd.f32 %v671_v59, %v2797_v27  ;;  %v785_v4 = vadd.f32 %v784_v62, %v2799_v28 }
 0x134   : > { %v673_v5 = vpop.f32.mrf.mxu0  ;;  %v786_v6 = vpop.f32.mrf.mxu1 }
 0x135   : > { %v2939_v7 = vsel %vm843_vm2, %v672_v1, -1e+30  ;;  %v2943_v10 = vsel %vm845_vm3, %v785_v4, -1e+30  ;;  %v674_v11 = vadd.f32 %v673_v5, %v2789_v23  ;;  %v787_v12 = vadd.f32 %v786_v6, %v2791_v24 }
 0x136   : > { %v675_v13 = vpop.f32.mrf.mxu0  ;;  %v788_v16 = vpop.f32.mrf.mxu1 }
 0x137   : > { %v2949_v17 = vsel %vm842_vm0, %v674_v11, -1e+30  ;;  %v2953_v18 = vsel %vm844_vm1, %v787_v12, -1e+30  ;;  %v676_v19 = vadd.f32 %v675_v13, %v2797_v27  ;;  %v789_v30 = vadd.f32 %v788_v16, %v2799_v28 }
 0x138   : > { %3847 = vst [vmem:[#allocation7_spill] sm:$0xff] %v2949_v17  ;;  %3848 = vst [vmem:[#allocation8_spill] sm:$0xff] %v2953_v18  ;;  %v679_v31 = vpop.f32.mrf.mxu0  ;;  %v792_v33 = vpop.f32.mrf.mxu1 }
 0x139   : > { %v2959_v34 = vsel %vm843_vm2, %v676_v19, -1e+30  ;;  %v2963_v39 = vsel %vm845_vm3, %v789_v30, -1e+30  ;;  %v680_v40 = vadd.f32 %v679_v31, %v2789_v23  ;;  %v793_v41 = vadd.f32 %v792_v33, %v2791_v24 }
 0x13a   : > { %3849 = vst [vmem:[#allocation9_spill] sm:$0xff] %v2959_v34  ;;  %3850 = vst [vmem:[#allocation10_spill] sm:$0xff] %v2963_v39  ;;  %v681_v44 = vpop.f32.mrf.mxu0  ;;  %v794_v47 = vpop.f32.mrf.mxu1 }
 0x13b   : > { %v2969_v50 = vsel %vm842_vm0, %v680_v40, -1e+30  ;;  %v2973_v51 = vsel %vm844_vm1, %v793_v41, -1e+30  ;;  %v682_v52 = vadd.f32 %v681_v44, %v2797_v27  ;;  %v795_v57 = vadd.f32 %v794_v47, %v2799_v28 }
 0x13c   : > { %3851 = vst [vmem:[#allocation11_spill] sm:$0xff] %v2969_v50  ;;  %3852 = vst [vmem:[#allocation12_spill] sm:$0xff] %v2973_v51  ;;  %v683_v58 = vpop.f32.mrf.mxu0  ;;  %v796_v59 = vpop.f32.mrf.mxu1 }
 0x13d   : > { %v2979_v62 = vsel %vm843_vm2, %v682_v52, -1e+30  ;;  %v2983_v1 = vsel %vm845_vm3, %v795_v57, -1e+30  ;;  %v684_v4 = vadd.f32 %v683_v58, %v2789_v23  ;;  %v797_v5 = vadd.f32 %v796_v59, %v2791_v24 }
 0x13e   : > { %3853 = vst [vmem:[#allocation13_spill] sm:$0xff] %v2979_v62  ;;  %3854 = vst [vmem:[#allocation14_spill] sm:$0xff] %v2983_v1  ;;  %v685_v6 = vpop.f32.mrf.mxu0  ;;  %v798_v11 = vpop.f32.mrf.mxu1 }
 0x13f   : > { %v2989_v12 = vsel %vm842_vm0, %v684_v4, -1e+30  ;;  %v2993_v13 = vsel %vm844_vm1, %v797_v5, -1e+30  ;;  %v686_v16 = vadd.f32 %v685_v6, %v2797_v27  ;;  %v799_v19 = vadd.f32 %v798_v11, %v2799_v28 }
 0x140   : > { %v689_v30 = vpop.f32.mrf.mxu0  ;;  %v802_v31 = vpop.f32.mrf.mxu1 }
 0x141   : > { %v2999_v33 = vsel %vm843_vm2, %v686_v16, -1e+30  ;;  %v3003_v40 = vsel %vm845_vm3, %v799_v19, -1e+30  ;;  %v690_v41 = vadd.f32 %v689_v30, %v2789_v23  ;;  %v803_v44 = vadd.f32 %v802_v31, %v2791_v24 }
 0x142   : > { %v691_v47 = vpop.f32.mrf.mxu0  ;;  %v804_v52 = vpop.f32.mrf.mxu1 }
 0x143   : > { %v3009_v57 = vsel %vm842_vm0, %v690_v41, -1e+30  ;;  %v3013_v58 = vsel %vm844_vm1, %v803_v44, -1e+30  ;;  %v692_v59 = vadd.f32 %v691_v47, %v2797_v27  ;;  %v805_v4 = vadd.f32 %v804_v52, %v2799_v28 }
 0x144   : > { %3855 = vst [vmem:[#allocation15_spill] sm:$0xff] %v3009_v57  ;;  %3856 = vst [vmem:[#allocation16_spill] sm:$0xff] %v3013_v58  ;;  %v693_v5 = vpop.f32.mrf.mxu0  ;;  %v806_v6 = vpop.f32.mrf.mxu1 }
 0x145   : > { %v3019_v11 = vsel %vm843_vm2, %v692_v59, -1e+30  ;;  %v3023_v16 = vsel %vm845_vm3, %v805_v4, -1e+30  ;;  %v694_v19 = vadd.f32 %v693_v5, %v2789_v23  ;;  %v807_v30 = vadd.f32 %v806_v6, %v2791_v24 }
 0x146   : > { %3857 = vst [vmem:[#allocation17_spill] sm:$0xff] %v3019_v11  ;;  %3858 = vst [vmem:[#allocation18_spill] sm:$0xff] %v3023_v16  ;;  %v695_v31 = vpop.f32.mrf.mxu0  ;;  %v808_v41 = vpop.f32.mrf.mxu1 }
 0x147   : > { %v3029_v44 = vsel %vm842_vm0, %v694_v19, -1e+30  ;;  %v3033_v47 = vsel %vm844_vm1, %v807_v30, -1e+30  ;;  %v696_v52 = vadd.f32 %v695_v31, %v2797_v27  ;;  %v809_v59 = vadd.f32 %v808_v41, %v2799_v28 }
 0x148   : > { %3859 = vst [vmem:[#allocation19_spill] sm:$0xff] %v3033_v47  ;;  %v699_v4 = vpop.f32.mrf.mxu0  ;;  %v812_v32 = vpop.f32.mrf.mxu1 }
 0x149   : > { %v3039_v5 = vsel %vm843_vm2, %v696_v52, -1e+30  ;;  %v3043_v6 = vsel %vm845_vm3, %v809_v59, -1e+30  ;;  %v700_v19 = vadd.f32 %v699_v4, %v2789_v23  ;;  %v813_v16 = vadd.f32 %v812_v32, %v2791_v24 }
 0x14a   : > { %3860 = vst [vmem:[#allocation20_spill] sm:$0xff] %v3043_v6  ;;  %v701_v30 = vpop.f32.mrf.mxu0  ;;  %v814_v58 = vpop.f32.mrf.mxu1 }
 0x14b   : > { %v3049_v31 = vsel %vm842_vm0, %v700_v19, -1e+30  ;;  %v3053_v41 = vsel %vm844_vm1, %v813_v16, -1e+30  ;;  %v702_v52 = vadd.f32 %v701_v30, %v2797_v27  ;;  %v815_v1 = vadd.f32 %v814_v58, %v2799_v28 }
 0x14c   : > { %3861 = vst [vmem:[#allocation21_spill] sm:$0xff] %v3049_v31  ;;  %3862 = vst [vmem:[#allocation22_spill] sm:$0xff] %v3053_v41  ;;  %v703_v59 = vpop.f32.mrf.mxu0  ;;  %v816_v6 = vpop.f32.mrf.mxu1 }
 0x14d   : > { %v3059_v4 = vsel %vm843_vm2, %v702_v52, -1e+30  ;;  %v3063_v32 = vsel %vm845_vm3, %v815_v1, -1e+30  ;;  %v704_v19 = vadd.f32 %v703_v59, %v2789_v23  ;;  %v817_v47 = vadd.f32 %v816_v6, %v2791_v24 }
 0x14e   : > { %3863 = vst [vmem:[#allocation23_spill] sm:$0xff] %v3059_v4  ;;  %3864 = vst [vmem:[#allocation24_spill] sm:$0xff] %v3063_v32  ;;  %v705_v16 = vpop.f32.mrf.mxu0  ;;  %v818_v41 = vpop.f32.mrf.mxu1 }
 0x14f   : > { %v3069_v30 = vsel %vm842_vm0, %v704_v19, -1e+30  ;;  %v3073_v58 = vsel %vm844_vm1, %v817_v47, -1e+30  ;;  %v706_v52 = vadd.f32 %v705_v16, %v2797_v27  ;;  %v819_v31 = vadd.f32 %v818_v41, %v2799_v28 }
 0x150   : > { %3865 = vst [vmem:[#allocation25_spill] sm:$0xff] %v3069_v30  ;;  %3866 = vst [vmem:[#allocation26_spill] sm:$0xff] %v3073_v58  ;;  %v709_v1 = vpop.f32.mrf.mxu0  ;;  %v822_v32 = vpop.f32.mrf.mxu1 }
 0x151   : > { %v3079_v59 = vsel %vm843_vm2, %v706_v52, -1e+30  ;;  %v3083_v6 = vsel %vm845_vm3, %v819_v31, -1e+30  ;;  %v710_v19 = vadd.f32 %v709_v1, %v2789_v23  ;;  %v823_v4 = vadd.f32 %v822_v32, %v2791_v24 }
 0x152   : > { %3867 = vst [vmem:[#allocation27_spill] sm:$0xff] %v3083_v6  ;;  %v711_v47 = vpop.f32.mrf.mxu0  ;;  %v824_v58 = vpop.f32.mrf.mxu1 }
 0x153   : > { %v3089_v16 = vsel %vm842_vm0, %v710_v19, -1e+30  ;;  %v3093_v41 = vsel %vm844_vm1, %v823_v4, -1e+30  ;;  %v712_v52 = vadd.f32 %v711_v47, %v2797_v27  ;;  %v825_v31 = vadd.f32 %v824_v58, %v2799_v28 }
 0x154   : > { %3868 = vst [vmem:[#allocation28_spill] sm:$0xff] %v3089_v16  ;;  %3869 = vst [vmem:[#allocation29_spill] sm:$0xff] %v3093_v41  ;;  %v713_v6 = vpop.f32.mrf.mxu0  ;;  %v826_v30 = vpop.f32.mrf.mxu1 }
 0x155   : > { %v3099_v32 = vsel %vm843_vm2, %v712_v52, -1e+30  ;;  %v3103_v1 = vsel %vm845_vm3, %v825_v31, -1e+30  ;;  %v714_v19 = vadd.f32 %v713_v6, %v2789_v23  ;;  %v827_v4 = vadd.f32 %v826_v30, %v2791_v24 }
 0x156   : > { %3870 = vst [vmem:[#allocation30_spill] sm:$0xff] %v3099_v32  ;;  %3871 = vst [vmem:[#allocation31_spill] sm:$0xff] %v3103_v1  ;;  %v715_v41 = vpop.f32.mrf.mxu0  ;;  %v828_v16 = vpop.f32.mrf.mxu1  ;;  %913 = sbr.rel (%p1986_p2) target bundleno = 364 (0x16c), region = 59 }
 0x157   : > { %v3109_v47 = vsel %vm842_vm0, %v714_v19, -1e+30  ;;  %v3113_v58 = vsel %vm844_vm1, %v827_v4, -1e+30  ;;  %v716_v52 = vadd.f32 %v715_v41, %v2797_v27  ;;  %v829_v32 = vadd.f32 %v828_v16, %v2799_v28 }
 0x159   : > { %v3119_v31 = vsel %vm843_vm2, %v716_v52, -1e+30  ;;  %v3123_v23 = vsel %vm845_vm3, %v829_v32, -1e+30 }
 0x15a   : > { %3872 = vst [vmem:[#allocation32_spill] sm:$0xff] %v3119_v31  ;;  %3873 = vst [vmem:[#allocation33_spill] sm:$0xff] %v3123_v23 }
 0x15b   : > { %vm916_vm4 = vcmask 7168   ;;  %v2536_v21 = vmov -1e+30   ;;  %v2537_v22 = vmov 0.0  }
 0x15c   : > { %917 = vst.msk [vmem:[%s915_s26] sm:$0xff] %vm916_vm4, %v2536_v21  ;;  %918 = vst.msk [vmem:[%s915_s26 + $0x8] sm:$0xff] %vm916_vm4, %v2536_v21 }
 0x15d   : > { %919 = vst.msk [vmem:[%s915_s26 + $0x10] sm:$0xff] %vm916_vm4, %v2536_v21  ;;  %920 = vst.msk [vmem:[%s915_s26 + $0x18] sm:$0xff] %vm916_vm4, %v2536_v21 }
 0x15e   : > { %921 = vst.msk [vmem:[%s915_s26 + $0x20] sm:$0xff] %vm916_vm4, %v2536_v21  ;;  %922 = vst.msk [vmem:[%s915_s26 + $0x28] sm:$0xff] %vm916_vm4, %v2536_v21 }
 0x15f   : > { %923 = vst.msk [vmem:[%s915_s26 + $0x30] sm:$0xff] %vm916_vm4, %v2536_v21  ;;  %924 = vst.msk [vmem:[%s915_s26 + $0x38] sm:$0xff] %vm916_vm4, %v2536_v21 }
 0x160   : > { %925 = vst.msk [vmem:[%s915_s26 + $0x40] sm:$0xff] %vm916_vm4, %v2536_v21  ;;  %926 = vst.msk [vmem:[%s915_s26 + $0x48] sm:$0xff] %vm916_vm4, %v2536_v21 }
 0x161   : > { %927 = vst.msk [vmem:[%s915_s26 + $0x50] sm:$0xff] %vm916_vm4, %v2536_v21  ;;  %928 = vst.msk [vmem:[%s915_s26 + $0x58] sm:$0xff] %vm916_vm4, %v2536_v21 }
 0x162   : > { %929 = vst.msk [vmem:[%s915_s26 + $0x60] sm:$0xff] %vm916_vm4, %v2536_v21  ;;  %930 = vst.msk [vmem:[%s915_s26 + $0x68] sm:$0xff] %vm916_vm4, %v2536_v21 }
 0x163   : > { %931 = vst.msk [vmem:[%s915_s26 + $0x70] sm:$0xff] %vm916_vm4, %v2536_v21  ;;  %932 = vst.msk [vmem:[%s915_s26 + $0x78] sm:$0xff] %vm916_vm4, %v2536_v21 }
 0x164   : > { %934 = vst.msk [vmem:[%s933_s17] sm:$0xff] %vm916_vm4, %v2537_v22  ;;  %935 = vst.msk [vmem:[%s933_s17 + $0x8] sm:$0xff] %vm916_vm4, %v2537_v22 }
 0x165   : > { %936 = vst.msk [vmem:[%s933_s17 + $0x10] sm:$0xff] %vm916_vm4, %v2537_v22  ;;  %937 = vst.msk [vmem:[%s933_s17 + $0x18] sm:$0xff] %vm916_vm4, %v2537_v22 }
 0x166   : > { %938 = vst.msk [vmem:[%s933_s17 + $0x20] sm:$0xff] %vm916_vm4, %v2537_v22  ;;  %939 = vst.msk [vmem:[%s933_s17 + $0x28] sm:$0xff] %vm916_vm4, %v2537_v22 }
 0x167   : > { %940 = vst.msk [vmem:[%s933_s17 + $0x30] sm:$0xff] %vm916_vm4, %v2537_v22  ;;  %941 = vst.msk [vmem:[%s933_s17 + $0x38] sm:$0xff] %vm916_vm4, %v2537_v22 }
 0x168   : > { %942 = vst.msk [vmem:[%s933_s17 + $0x40] sm:$0xff] %vm916_vm4, %v2537_v22  ;;  %943 = vst.msk [vmem:[%s933_s17 + $0x48] sm:$0xff] %vm916_vm4, %v2537_v22 }
 0x169   : > { %944 = vst.msk [vmem:[%s933_s17 + $0x50] sm:$0xff] %vm916_vm4, %v2537_v22  ;;  %945 = vst.msk [vmem:[%s933_s17 + $0x58] sm:$0xff] %vm916_vm4, %v2537_v22 }
 0x16a   : > { %946 = vst.msk [vmem:[%s933_s17 + $0x60] sm:$0xff] %vm916_vm4, %v2537_v22  ;;  %947 = vst.msk [vmem:[%s933_s17 + $0x68] sm:$0xff] %vm916_vm4, %v2537_v22 }
 0x16b   : > { %948 = vst.msk [vmem:[%s933_s17 + $0x70] sm:$0xff] %vm916_vm4, %v2537_v22  ;;  %949 = vst.msk [vmem:[%s933_s17 + $0x78] sm:$0xff] %vm916_vm4, %v2537_v22 }
 0x16c PF: > { %v978_v24 = vmax.f32 %v2849_v60, %v2859_v2  ;;  %v968_v25 = vmax.f32 %v2809_v36, %v2819_v42  ;;  %v983_v26 = vmax.f32 %v2869_v8, %v2879_v14  ;;  %v973_v27 = vmax.f32 %v2829_v48, %v2839_v54  ;;  %s3229_s25 = sshll.u32 %s2485_s16, 7  ;;  %s1618_s28 = ssub.s32 (%p2628_p9), 18, %s2726_s12 }
 0x16d   : > { %v3874_v28 = vmov 0   ;;  %v993_v30 = vmax.f32 %v2909_v45, %v2919_v53  ;;  %v988_v6 = vmax.f32 %v2889_v20, %v2899_v35  ;;  %v1003_v22 = vmax.f32 %v2949_v17, %v2959_v34  ;;  %v3884_v34 = vld [vmem:[#allocation20_spill] sm:$0xff]  ;;  %s3232_s14 = scalar_lea.vmem [#allocation2], %s3229_s25  ;;  %s3313_s16 = scalar_lea.vmem [#allocation3], %s3229_s25 }
 0x16e   : > { %2205 = vset.pattern.permute.xlu0 %v3874_v28  ;;  %2206 = vset.pattern.permute.xlu1 %v3874_v28  ;;  %v979_v16 = vmax.f32 %v978_v24, %v2853_v61  ;;  %v969_v41 = vmax.f32 %v968_v25, %v2813_v37  ;;  %v984_v32 = vmax.f32 %v983_v26, %v2873_v9  ;;  %vm1513_vm5 = vcmask 7168   ;;  %s3685_s6 = scalar_lea.vmem (%p2628_p9), %s3798_s3, %s3229_s25   ;;  %p1619_p3 = scmp.lt.s32.totalorder (%p2628_p9), %s1618_s28, 16 }
 0x16f   : > { %v974_v19 = vmax.f32 %v973_v27, %v2833_v49  ;;  %v994_v21 = vmax.f32 %v993_v30, %v2913_v46  ;;  %v989_v53 = vmax.f32 %v988_v6, %v2893_v29  ;;  %v998_v26 = vmax.f32 %v2929_v63, %v2939_v7 }
 0x170   : > { %v980_v4 = vmax.f32 %v979_v16, %v2863_v3  ;;  %v970_v52 = vmax.f32 %v969_v41, %v2823_v43  ;;  %v985_v24 = vmax.f32 %v984_v32, %v2883_v15  ;;  %v1004_v28 = vmax.f32 %v1003_v22, %v2953_v18 }
 0x171   : > { %v975_v25 = vmax.f32 %v974_v19, %v2843_v55  ;;  %v995_v27 = vmax.f32 %v994_v21, %v2923_v56  ;;  %v1013_v30 = vmax.f32 %v2989_v12, %v2999_v33  ;;  %v990_v6 = vmax.f32 %v989_v53, %v2903_v38 }
 0x172   : > { %981 = vmax.xlane.f32.xlu1 %v980_v4  ;;  %971 = vmax.xlane.f32.xlu0 %v970_v52  ;;  %v999_v16 = vmax.f32 %v998_v26, %v2933_v0  ;;  %v1008_v41 = vmax.f32 %v2969_v50, %v2979_v62  ;;  %v1005_v32 = vmax.f32 %v1004_v28, %v2963_v39  ;;  %v3876_v26 = vld [vmem:[#allocation23_spill] sm:$0xff]  ;;  %v3877_v28 = vld [vmem:[#allocation21_spill] sm:$0xff] }
 0x173   : > { %v1014_v19 = vmax.f32 %v1013_v30, %v2993_v13  ;;  %v1023_v4 = vmax.f32 %v3029_v44, %v3039_v5  ;;  %v1018_v53 = vmax.f32 %v3009_v57, %v3019_v11  ;;  %v1028_v30 = vmax.f32 %v3877_v28, %v3876_v26  ;;  %v3878_v62 = vld [vmem:[#allocation19_spill] sm:$0xff]  ;;  %v3883_v57 = vld [vmem:[#allocation28_spill] sm:$0xff] }
 0x174   : > { %v1000_v52 = vmax.f32 %v999_v16, %v2943_v10  ;;  %v1009_v21 = vmax.f32 %v1008_v41, %v2973_v51  ;;  %v3880_v16 = vld [vmem:[#allocation16_spill] sm:$0xff]  ;;  %v3881_v41 = vld [vmem:[#allocation26_spill] sm:$0xff]  ;;  %v1043_v11 = vmax.f32 %v3109_v47, %v3119_v31 }
 0x175   : > { %v1015_v22 = vmax.f32 %v1014_v19, %v3003_v40  ;;  %v1024_v50 = vmax.f32 %v1023_v4, %v3878_v62  ;;  %v1019_v39 = vmax.f32 %v1018_v53, %v3880_v16  ;;  %v3882_v19 = vld [vmem:[#allocation30_spill] sm:$0xff]  ;;  %v3887_v53 = vld [vmem:[#allocation27_spill] sm:$0xff]  ;;  %v3888_v28 = vld [vmem:[#allocation24_spill] sm:$0xff] }
 0x176   : > { %986 = vmax.xlane.f32.xlu1 %v985_v24  ;;  %976 = vmax.xlane.f32.xlu0 %v975_v25  ;;  %v3875_v24 = vld [vmem:[#allocation25_spill] sm:$0xff]  ;;  %v1038_v18 = vmax.f32 %v3883_v57, %v3882_v19  ;;  %v960_v19 = vld [vmem:[%s3232_s14 + $0x40] sm:$0xff]  ;;  %v962_v57 = vld [vmem:[%s3232_s14 + $0x50] sm:$0xff] }
 0x177   : > { %v1033_v25 = vmax.f32 %v3875_v24, %v3079_v59  ;;  %v1025_v17 = vmax.f32 %v1024_v50, %v3884_v34 }
 0x179   : > { %v1034_v51 = vmax.f32 %v1033_v25, %v3881_v41 }
 0x17a   : > { %996 = vmax.xlane.f32.xlu1 %v995_v27  ;;  %991 = vmax.xlane.f32.xlu0 %v990_v6  ;;  %v3879_v27 = vld [vmem:[#allocation14_spill] sm:$0xff] }
 0x17b   : > { %v1010_v6 = vmax.f32 %v1009_v21, %v3879_v27  ;;  %v1044_v21 = vmax.f32 %v1043_v11, %v3113_v58  ;;  %v1035_v25 = vmax.f32 %v1034_v51, %v3887_v53  ;;  %v3889_v27 = vld [vmem:[#allocation29_spill] sm:$0xff] }
 0x17c   : > { %v1039_v31 = vmax.f32 %v1038_v18, %v3889_v27  ;;  %v952_v18 = vld [vmem:[%s3232_s14] sm:$0xff]  ;;  %v958_v27 = vld [vmem:[%s3232_s14 + $0x30] sm:$0xff] }
 0x17e   : > { %1006 = vmax.xlane.f32.xlu1 %v1005_v32  ;;  %1001 = vmax.xlane.f32.xlu0 %v1000_v52  ;;  %v3885_v32 = vld [vmem:[#allocation18_spill] sm:$0xff]  ;;  %v1040_v50 = vmax.f32 %v1039_v31, %v3103_v1  ;;  %v959_v1 = vld [vmem:[%s3232_s14 + $0x38] sm:$0xff] }
 0x17f   : > { %v1020_v4 = vmax.f32 %v1019_v39, %v3885_v32  ;;  %v3886_v52 = vld [vmem:[#allocation22_spill] sm:$0xff] }
 0x180   : > { %v1029_v26 = vmax.f32 %v1028_v30, %v3886_v52  ;;  %v953_v30 = vld [vmem:[%s3232_s14 + $0x8] sm:$0xff]  ;;  %v964_v52 = vld [vmem:[%s3232_s14 + $0x60] sm:$0xff] }
 0x182   : > { %1016 = vmax.xlane.f32.xlu1 %v1015_v22  ;;  %1011 = vmax.xlane.f32.xlu0 %v1010_v6  ;;  %v1030_v16 = vmax.f32 %v1029_v26, %v3888_v28  ;;  %v1045_v22 = vmax.f32 %v1044_v21, %v3123_v23  ;;  %v955_v26 = vld [vmem:[%s3232_s14 + $0x18] sm:$0xff]  ;;  %v965_v28 = vld [vmem:[%s3232_s14 + $0x68] sm:$0xff] }
 0x186   : > { %1026 = vmax.xlane.f32.xlu1 %v1025_v17  ;;  %1021 = vmax.xlane.f32.xlu0 %v1020_v4  ;;  %v954_v17 = vld [vmem:[%s3232_s14 + $0x10] sm:$0xff] }
 0x18a   : > { %1036 = vmax.xlane.f32.xlu1 %v1035_v25  ;;  %1031 = vmax.xlane.f32.xlu0 %v1030_v16 }
 0x18e   : > { %1046 = vmax.xlane.f32.xlu1 %v1045_v22  ;;  %1041 = vmax.xlane.f32.xlu0 %v1040_v50 }
 0x1fb   : > { %v982_v39 = vpop.xlane.xlu1 %981  ;;  %v972_v51 = vpop.xlane.xlu0 %971 }
 0x1fc   : > { %v3236_v11 = vmax.f32 %v954_v17, %v982_v39  ;;  %v3238_v31 = vmax.f32 %v952_v18, %v972_v51  ;;  %v956_v51 = vld [vmem:[%s3232_s14 + $0x20] sm:$0xff] }
 0x1fe   : > { %3890 = vst [vmem:[#allocation25_spill] sm:$0xff] %v3236_v11  ;;  %3891 = vst [vmem:[#allocation19_spill] sm:$0xff] %v3238_v31  ;;  %v1083_v6 = vsub.f32 %v954_v17, %v3236_v11  ;;  %v1081_v16 = vsub.f32 %v952_v18, %v3238_v31  ;;  %1147 = vperm.xlu0 %2205, %v3238_v31   ;;  %v957_v17 = vld [vmem:[%s3232_s14 + $0x28] sm:$0xff] }
 0x1ff   : > { %1516 = vst.msk [vmem:[%s3232_s14 + $0x10] sm:$0xff] %vm1513_vm5, %v3236_v11  ;;  %1514 = vst.msk [vmem:[%s3232_s14] sm:$0xff] %vm1513_vm5, %v3238_v31  ;;  %v987_v4 = vpop.xlane.xlu1 %986  ;;  %v977_v21 = vpop.xlane.xlu0 %976 }
 0x200   : > { %v1101_v25 = vmul.f32 1.442695, %v1083_v6  ;;  %v1097_v22 = vmul.f32 1.442695, %v1081_v16  ;;  %v3251_v50 = vmax.f32 %v955_v26, %v987_v4  ;;  %v3253_v39 = vmax.f32 %v953_v30, %v977_v21 }
 0x202   : > { %3892 = vst [vmem:[#allocation26_spill] sm:$0xff] %v3251_v50  ;;  %3893 = vst [vmem:[#allocation20_spill] sm:$0xff] %v3253_v39  ;;  %2207 = vpow2.f32 %v1101_v25  ;;  %v1084_v18 = vsub.f32 %v955_v26, %v3251_v50  ;;  %v1082_v31 = vsub.f32 %v953_v30, %v3253_v39  ;;  %1152 = vperm.xlu1 %2206, %v3253_v39  }
 0x203   : > { %1517 = vst.msk [vmem:[%s3232_s14 + $0x18] sm:$0xff] %vm1513_vm5, %v3251_v50  ;;  %1515 = vst.msk [vmem:[%s3232_s14 + $0x8] sm:$0xff] %vm1513_vm5, %v3253_v39  ;;  %2209 = vpow2.f32 %v1097_v22  ;;  %v997_v6 = vpop.xlane.xlu1 %996  ;;  %v992_v16 = vpop.xlane.xlu0 %991  ;;  %v961_v39 = vld [vmem:[%s3232_s14 + $0x48] sm:$0xff] }
 0x204   : > { %v1103_v4 = vmul.f32 1.442695, %v1084_v18  ;;  %v1099_v21 = vmul.f32 1.442695, %v1082_v31  ;;  %v3266_v25 = vmax.f32 %v957_v17, %v997_v6  ;;  %v3268_v26 = vmax.f32 %v956_v51, %v992_v16 }
 0x206   : > { %3894 = vst [vmem:[#allocation27_spill] sm:$0xff] %v3266_v25  ;;  %3895 = vst [vmem:[#allocation34_spill] sm:$0xff] %v3268_v26  ;;  %2211 = vpow2.f32 %v1103_v4  ;;  %v1086_v30 = vsub.f32 %v957_v17, %v3266_v25  ;;  %1157 = vperm.xlu1 %2206, %v3236_v11   ;;  %v1085_v22 = vsub.f32 %v956_v51, %v3268_v26  ;;  %v963_v11 = vld [vmem:[%s3232_s14 + $0x58] sm:$0xff] }
 0x207   : > { %1519 = vst.msk [vmem:[%s3232_s14 + $0x28] sm:$0xff] %vm1513_vm5, %v3266_v25  ;;  %1518 = vst.msk [vmem:[%s3232_s14 + $0x20] sm:$0xff] %vm1513_vm5, %v3268_v26  ;;  %2213 = vpow2.f32 %v1099_v21  ;;  %v1007_v31 = vpop.xlane.xlu1 %1006  ;;  %v1002_v18 = vpop.xlane.xlu0 %1001 }
 0x208   : > { %v1107_v6 = vmul.f32 1.442695, %v1086_v30  ;;  %v3281_v16 = vmax.f32 %v959_v1, %v1007_v31  ;;  %v1105_v4 = vmul.f32 1.442695, %v1085_v22  ;;  %v3283_v17 = vmax.f32 %v958_v27, %v1002_v18 }
 0x20a   : > { %3896 = vst [vmem:[#allocation35_spill] sm:$0xff] %v3281_v16  ;;  %3897 = vst [vmem:[#allocation36_spill] sm:$0xff] %v3283_v17  ;;  %2215 = vpow2.f32 %v1107_v6  ;;  %v1088_v51 = vsub.f32 %v959_v1, %v3281_v16  ;;  %1162 = vperm.xlu1 %2206, %v3251_v50   ;;  %v1087_v21 = vsub.f32 %v958_v27, %v3283_v17 }
 0x20b   : > { %1521 = vst.msk [vmem:[%s3232_s14 + $0x38] sm:$0xff] %vm1513_vm5, %v3281_v16  ;;  %1520 = vst.msk [vmem:[%s3232_s14 + $0x30] sm:$0xff] %vm1513_vm5, %v3283_v17  ;;  %v1017_v30 = vpop.xlane.xlu1 %1016  ;;  %2217 = vpow2.f32 %v1105_v4  ;;  %v1012_v22 = vpop.xlane.xlu0 %1011  ;;  %v1065_v4 = vld [vmem:[%s3313_s16] sm:$0xff] }
 0x20c   : > { %v1111_v31 = vmul.f32 1.442695, %v1088_v51  ;;  %v3296_v18 = vmax.f32 %v961_v39, %v1017_v30  ;;  %v1109_v1 = vmul.f32 1.442695, %v1087_v21  ;;  %v3298_v6 = vmax.f32 %v960_v19, %v1012_v22 }
 0x20e   : > { %3898 = vst [vmem:[#allocation37_spill] sm:$0xff] %v3296_v18  ;;  %3899 = vst [vmem:[#allocation38_spill] sm:$0xff] %v3298_v6  ;;  %2219 = vpow2.f32 %v1111_v31  ;;  %v1090_v50 = vsub.f32 %v961_v39, %v3296_v18  ;;  %1167 = vperm.xlu1 %2206, %v3268_v26   ;;  %1192 = vperm.xlu0 %2205, %v3296_v18   ;;  %v1089_v27 = vsub.f32 %v960_v19, %v3298_v6  ;;  %v1067_v39 = vld [vmem:[%s3313_s16 + $0x10] sm:$0xff] }
 0x20f   : > { %1523 = vst.msk [vmem:[%s3232_s14 + $0x48] sm:$0xff] %vm1513_vm5, %v3296_v18  ;;  %1522 = vst.msk [vmem:[%s3232_s14 + $0x40] sm:$0xff] %vm1513_vm5, %v3298_v6  ;;  %v2208_v51 = vpop.eup %2207  ;;  %v1027_v21 = vpop.xlane.xlu1 %1026  ;;  %2221 = vpow2.f32 %v1109_v1 }
 0x210   : > { %v1022_v30 = vpop.xlane.xlu0 %1021  ;;  %v2210_v22 = vpop.eup %2209  ;;  %v1115_v31 = vmul.f32 1.442695, %v1090_v50  ;;  %v3317_v19 = vmax.f32 %v963_v11, %v1027_v21  ;;  %v1113_v18 = vmul.f32 1.442695, %v1089_v27  ;;  %v3325_v23 = vmul.f32 %v2208_v51, %v1067_v39  ;;  %v1066_v27 = vld [vmem:[%s3313_s16 + $0x8] sm:$0xff] }
 0x211   : > { %v3319_v26 = vmax.f32 %v962_v57, %v1022_v30  ;;  %v3323_v32 = vmul.f32 %v2210_v22, %v1065_v4  ;;  %v1068_v4 = vld [vmem:[%s3313_s16 + $0x18] sm:$0xff] }
 0x212   : > { %3900 = vst [vmem:[#allocation39_spill] sm:$0xff] %v3317_v19  ;;  %3903 = vst [vmem:[#allocation42_spill] sm:$0xff] %v3325_v23  ;;  %2223 = vpow2.f32 %v1115_v31  ;;  %v1092_v1 = vsub.f32 %v963_v11, %v3317_v19  ;;  %1172 = vperm.xlu1 %2206, %v3266_v25   ;;  %1202 = vperm.xlu0 %2205, %v3317_v19   ;;  %v966_v25 = vld [vmem:[%s3232_s14 + $0x70] sm:$0xff] }
 0x213   : > { %3901 = vst [vmem:[#allocation40_spill] sm:$0xff] %v3319_v26  ;;  %3902 = vst [vmem:[#allocation41_spill] sm:$0xff] %v3323_v32  ;;  %v1091_v50 = vsub.f32 %v962_v57, %v3319_v26  ;;  %v2212_v39 = vpop.eup %2211  ;;  %v1037_v51 = vpop.xlane.xlu1 %1036  ;;  %2225 = vpow2.f32 %v1113_v18  ;;  %v967_v57 = vld [vmem:[%s3232_s14 + $0x78] sm:$0xff] }
 0x214   : > { %1525 = vst.msk [vmem:[%s3232_s14 + $0x58] sm:$0xff] %vm1513_vm5, %v3317_v19  ;;  %1524 = vst.msk [vmem:[%s3232_s14 + $0x50] sm:$0xff] %vm1513_vm5, %v3319_v26  ;;  %v1032_v11 = vpop.xlane.xlu0 %1031  ;;  %v2214_v21 = vpop.eup %2213  ;;  %v1119_v30 = vmul.f32 1.442695, %v1092_v1  ;;  %v3339_v22 = vmax.f32 %v965_v28, %v1037_v51  ;;  %v3347_v32 = vmul.f32 %v2212_v39, %v1068_v4 }
 0x215   : > { %v1117_v31 = vmul.f32 1.442695, %v1091_v50  ;;  %v3341_v19 = vmax.f32 %v964_v52, %v1032_v11  ;;  %v3345_v23 = vmul.f32 %v2214_v21, %v1066_v27  ;;  %v1069_v50 = vld [vmem:[%s3313_s16 + $0x20] sm:$0xff]  ;;  %v1070_v27 = vld [vmem:[%s3313_s16 + $0x28] sm:$0xff] }
 0x216   : > { %3904 = vst [vmem:[#allocation43_spill] sm:$0xff] %v3339_v22  ;;  %3907 = vst [vmem:[#allocation46_spill] sm:$0xff] %v3347_v32  ;;  %2227 = vpow2.f32 %v1119_v30  ;;  %v1094_v18 = vsub.f32 %v965_v28, %v3339_v22  ;;  %1177 = vperm.xlu1 %2206, %v3283_v17   ;;  %1212 = vperm.xlu0 %2205, %v3339_v22   ;;  %v1072_v32 = vld [vmem:[%s3313_s16 + $0x38] sm:$0xff] }
 0x217   : > { %3905 = vst [vmem:[#allocation44_spill] sm:$0xff] %v3341_v19  ;;  %3906 = vst [vmem:[#allocation45_spill] sm:$0xff] %v3345_v23  ;;  %v1093_v1 = vsub.f32 %v964_v52, %v3341_v19  ;;  %v2216_v4 = vpop.eup %2215  ;;  %v1047_v39 = vpop.xlane.xlu1 %1046  ;;  %2229 = vpow2.f32 %v1117_v31 }
 0x218   : > { %1527 = vst.msk [vmem:[%s3232_s14 + $0x68] sm:$0xff] %vm1513_vm5, %v3339_v22  ;;  %1526 = vst.msk [vmem:[%s3232_s14 + $0x60] sm:$0xff] %vm1513_vm5, %v3341_v19  ;;  %v1042_v28 = vpop.xlane.xlu0 %1041  ;;  %v2218_v51 = vpop.eup %2217  ;;  %v1123_v11 = vmul.f32 1.442695, %v1094_v18  ;;  %v3361_v21 = vmax.f32 %v967_v57, %v1047_v39  ;;  %v3367_v17 = vmul.f32 %v2216_v4, %v1070_v27  ;;  %v1071_v18 = vld [vmem:[%s3313_s16 + $0x30] sm:$0xff] }
 0x219   : > { %v1121_v30 = vmul.f32 1.442695, %v1093_v1  ;;  %v3363_v22 = vmax.f32 %v966_v25, %v1042_v28  ;;  %v3365_v52 = vmul.f32 %v2218_v51, %v1069_v50  ;;  %v1074_v28 = vld [vmem:[%s3313_s16 + $0x48] sm:$0xff] }
 0x21a   : > { %3908 = vst [vmem:[#allocation47_spill] sm:$0xff] %v3361_v21  ;;  %2231 = vpow2.f32 %v1123_v11  ;;  %v1096_v23 = vsub.f32 %v967_v57, %v3361_v21  ;;  %1529 = vst.msk [vmem:[%s3232_s14 + $0x78] sm:$0xff] %vm1513_vm5, %v3361_v21  ;;  %1182 = vperm.xlu1 %2206, %v3281_v16   ;;  %1222 = vperm.xlu0 %2205, %v3361_v21  }
 0x21b   : > { %3909 = vst [vmem:[#allocation48_spill] sm:$0xff] %v3363_v22  ;;  %v1095_v31 = vsub.f32 %v966_v25, %v3363_v22  ;;  %1528 = vst.msk [vmem:[%s3232_s14 + $0x70] sm:$0xff] %vm1513_vm5, %v3363_v22  ;;  %v2220_v1 = vpop.eup %2219  ;;  %2233 = vpow2.f32 %v1121_v30  ;;  %v1073_v25 = vld [vmem:[%s3313_s16 + $0x40] sm:$0xff] }
 0x21c   : > { %v2222_v50 = vpop.eup %2221  ;;  %v1127_v57 = vmul.f32 1.442695, %v1096_v23  ;;  %v3381_v4 = vmul.f32 %v2220_v1, %v1072_v32  ;;  %v1076_v23 = vld [vmem:[%s3313_s16 + $0x58] sm:$0xff]  ;;  %v1075_v32 = vld [vmem:[%s3313_s16 + $0x50] sm:$0xff] }
 0x21d   : > { %v1125_v27 = vmul.f32 1.442695, %v1095_v31  ;;  %v3383_v39 = vmul.f32 %v2222_v50, %v1071_v18 }
 0x21e   : > { %2235 = vpow2.f32 %v1127_v57  ;;  %1187 = vperm.xlu1 %2206, %v3298_v6   ;;  %v1078_v57 = vld [vmem:[%s3313_s16 + $0x68] sm:$0xff] }
 0x21f   : > { %v2224_v51 = vpop.eup %2223  ;;  %2237 = vpow2.f32 %v1125_v27  ;;  %v1077_v27 = vld [vmem:[%s3313_s16 + $0x60] sm:$0xff] }
 0x220   : > { %v2226_v11 = vpop.eup %2225  ;;  %v3388_v21 = vmul.f32 %v2224_v51, %v1074_v28 }
 0x221   : > { %v3390_v30 = vmul.f32 %v2226_v11, %v1073_v25  ;;  %v1080_v11 = vld [vmem:[%s3313_s16 + $0x78] sm:$0xff] }
 0x222   : > { %1197 = vperm.xlu1 %2206, %v3319_v26   ;;  %v1079_v26 = vld [vmem:[%s3313_s16 + $0x70] sm:$0xff] }
 0x223   : > { %3910 = vst [vmem:[#allocation49_spill] sm:$0xff] %v3390_v30  ;;  %v2228_v31 = vpop.eup %2227 }
 0x224   : > { %v2230_v18 = vpop.eup %2229  ;;  %v3395_v1 = vmul.f32 %v2228_v31, %v1076_v23 }
 0x225   : > { %v3397_v50 = vmul.f32 %v2230_v18, %v1075_v32 }
 0x226   : > { %1207 = vperm.xlu1 %2206, %v3341_v19  }
 0x227   : > { %v2232_v28 = vpop.eup %2231 }
 0x228   : > { %v2234_v51 = vpop.eup %2233  ;;  %v3402_v6 = vmul.f32 %v2232_v28, %v1078_v57 }
 0x229   : > { %v3404_v25 = vmul.f32 %v2234_v51, %v1077_v27 }
 0x22a   : > { %3911 = vst [vmem:[#allocation50_spill] sm:$0xff] %v3402_v6  ;;  %1217 = vperm.xlu1 %2206, %v3363_v22  }
 0x22b   : > { %3912 = vst [vmem:[#allocation51_spill] sm:$0xff] %v3404_v25  ;;  %v2236_v16 = vpop.eup %2235 }
 0x22c   : > { %v2238_v30 = vpop.eup %2237  ;;  %v3409_v23 = vmul.f32 %v2236_v16, %v1080_v11 }
 0x22d   : > { %v3411_v32 = vmul.f32 %v2238_v30, %v1079_v26 }
 0x279   : > { %v1148_v31 = vpop.permute.xlu0 %1147 }
 0x27a   : > { %v1225_v18 = vsub.f32 %v2809_v36, %v1148_v31  ;;  %v1226_v19 = vsub.f32 %v2819_v42, %v1148_v31  ;;  %v1227_v57 = vsub.f32 %v2813_v37, %v1148_v31  ;;  %v1228_v27 = vsub.f32 %v2823_v43, %v1148_v31 }
 0x27c   : > { %v1289_v28 = vmul.f32 1.442695, %v1225_v18  ;;  %v1291_v51 = vmul.f32 1.442695, %v1226_v19  ;;  %v1293_v25 = vmul.f32 1.442695, %v1227_v57 }
 0x27d   : > { %v1295_v22 = vmul.f32 1.442695, %v1228_v27  ;;  %v1153_v6 = vpop.permute.xlu1 %1152 }
 0x27e   : > { %2239 = vpow2.f32 %v1289_v28  ;;  %v1229_v16 = vsub.f32 %v2829_v48, %v1153_v6  ;;  %v1230_v26 = vsub.f32 %v2839_v54, %v1153_v6  ;;  %v1231_v30 = vsub.f32 %v2833_v49, %v1153_v6 }
 0x27f   : > { %2241 = vpow2.f32 %v1291_v51  ;;  %v1232_v36 = vsub.f32 %v2843_v55, %v1153_v6 }
 0x280   : > { %2243 = vpow2.f32 %v1293_v25  ;;  %v1297_v42 = vmul.f32 1.442695, %v1229_v16  ;;  %v1299_v37 = vmul.f32 1.442695, %v1230_v26  ;;  %v1301_v11 = vmul.f32 1.442695, %v1231_v30 }
 0x281   : > { %2245 = vpow2.f32 %v1295_v22  ;;  %v1303_v43 = vmul.f32 1.442695, %v1232_v36  ;;  %v1158_v19 = vpop.permute.xlu1 %1157 }
 0x282   : > { %2247 = vpow2.f32 %v1297_v42  ;;  %v1233_v31 = vsub.f32 %v2849_v60, %v1158_v19  ;;  %v1234_v18 = vsub.f32 %v2859_v2, %v1158_v19  ;;  %v1235_v48 = vsub.f32 %v2853_v61, %v1158_v19 }
 0x283   : > { %2249 = vpow2.f32 %v1299_v37  ;;  %v1236_v49 = vsub.f32 %v2863_v3, %v1158_v19 }
 0x284   : > { %2251 = vpow2.f32 %v1301_v11  ;;  %v1305_v54 = vmul.f32 1.442695, %v1233_v31  ;;  %v1307_v55 = vmul.f32 1.442695, %v1234_v18  ;;  %v1309_v6 = vmul.f32 1.442695, %v1235_v48 }
 0x285   : > { %2253 = vpow2.f32 %v1303_v43  ;;  %v1311_v25 = vmul.f32 1.442695, %v1236_v49  ;;  %v1163_v57 = vpop.permute.xlu1 %1162 }
 0x286   : > { %2255 = vpow2.f32 %v1305_v54  ;;  %v1237_v22 = vsub.f32 %v2869_v8, %v1163_v57  ;;  %v1238_v27 = vsub.f32 %v2879_v14, %v1163_v57  ;;  %v1239_v60 = vsub.f32 %v2873_v9, %v1163_v57  ;;  %v3913_v54 = vld [vmem:[#allocation6_spill] sm:$0xff] }
 0x287   : > { %2257 = vpow2.f32 %v1307_v55  ;;  %v1240_v61 = vsub.f32 %v2883_v15, %v1163_v57 }
 0x288   : > { %2259 = vpow2.f32 %v1309_v6  ;;  %v1313_v2 = vmul.f32 1.442695, %v1237_v22  ;;  %v1315_v3 = vmul.f32 1.442695, %v1238_v27  ;;  %v1317_v28 = vmul.f32 1.442695, %v1239_v60 }
 0x289   : > { %2261 = vpow2.f32 %v1311_v25  ;;  %v1319_v51 = vmul.f32 1.442695, %v1240_v61  ;;  %v1168_v16 = vpop.permute.xlu1 %1167  ;;  %v1193_v26 = vpop.permute.xlu0 %1192 }
 0x28a   : > { %2263 = vpow2.f32 %v1313_v2  ;;  %v1241_v30 = vsub.f32 %v2889_v20, %v1168_v16  ;;  %v1242_v8 = vsub.f32 %v2899_v35, %v1168_v16  ;;  %v1243_v14 = vsub.f32 %v2893_v29, %v1168_v16 }
 0x28b   : > { %v3432_v36 = vpop.eup %2239  ;;  %2265 = vpow2.f32 %v1315_v3  ;;  %v1244_v9 = vsub.f32 %v2903_v38, %v1168_v16  ;;  %v1261_v15 = vsub.f32 %v2989_v12, %v1193_v26  ;;  %v1262_v42 = vsub.f32 %v2999_v33, %v1193_v26 }
 0x28c   : > { %v3437_v37 = vpop.eup %2241  ;;  %2267 = vpow2.f32 %v1317_v28  ;;  %v1321_v11 = vmul.f32 1.442695, %v1241_v30  ;;  %v1323_v43 = vmul.f32 1.442695, %v1242_v8  ;;  %v1325_v19 = vmul.f32 1.442695, %v1243_v14 }
 0x28d   : > { %v3439_v20 = vpop.eup %2243  ;;  %2269 = vpow2.f32 %v1319_v51  ;;  %v1327_v35 = vmul.f32 1.442695, %v1244_v9  ;;  %v1263_v29 = vsub.f32 %v2993_v13, %v1193_v26  ;;  %v1264_v31 = vsub.f32 %v3003_v40, %v1193_v26  ;;  %v1173_v18 = vpop.permute.xlu1 %1172 }
 0x28e   : > { %v3443_v38 = vpop.eup %2245  ;;  %2271 = vpow2.f32 %v1321_v11  ;;  %v1361_v12 = vmul.f32 1.442695, %v1261_v15  ;;  %v1245_v33 = vsub.f32 %v2909_v45, %v1173_v18  ;;  %v1363_v49 = vmul.f32 1.442695, %v1262_v42  ;;  %v1203_v6 = vpop.permute.xlu0 %1202 }
 0x28f   : > { %v3446_v48 = vpop.eup %2247  ;;  %2273 = vpow2.f32 %v1323_v43  ;;  %v1246_v55 = vsub.f32 %v3913_v54, %v1173_v18  ;;  %v1365_v13 = vmul.f32 1.442695, %v1263_v29  ;;  %v1247_v40 = vsub.f32 %v2913_v46, %v1173_v18 }
 0x290   : > { %v3449_v25 = vpop.eup %2249  ;;  %2275 = vpow2.f32 %v1325_v19  ;;  %v1367_v22 = vmul.f32 1.442695, %v1264_v31  ;;  %v1248_v27 = vsub.f32 %v2923_v56, %v1173_v18  ;;  %v1329_v61 = vmul.f32 1.442695, %v1245_v33 }
 0x291   : > { %v3452_v57 = vpop.eup %2251  ;;  %2277 = vpow2.f32 %v1327_v35  ;;  %v1178_v45 = vpop.permute.xlu1 %1177  ;;  %v1269_v2 = vsub.f32 %v3029_v44, %v1203_v6  ;;  %v1331_v28 = vmul.f32 1.442695, %v1246_v55  ;;  %v1270_v51 = vsub.f32 %v3039_v5, %v1203_v6 }
 0x292   : > { %v3455_v60 = vpop.eup %2253  ;;  %2279 = vpow2.f32 %v1361_v12  ;;  %v1333_v16 = vmul.f32 1.442695, %v1247_v40  ;;  %v1271_v26 = vsub.f32 %v3878_v62, %v1203_v6  ;;  %v1335_v30 = vmul.f32 1.442695, %v1248_v27  ;;  %v1213_v11 = vpop.permute.xlu0 %1212  ;;  %v3914_v40 = vld [vmem:[#allocation7_spill] sm:$0xff] }
 0x293   : > { %v3458_v3 = vpop.eup %2255  ;;  %2281 = vpow2.f32 %v1363_v49  ;;  %v1272_v8 = vsub.f32 %v3884_v34, %v1203_v6  ;;  %v1377_v44 = vmul.f32 1.442695, %v1269_v2  ;;  %v1249_v9 = vsub.f32 %v2929_v63, %v1178_v45 }
 0x294   : > { %v3461_v46 = vpop.eup %2257  ;;  %2283 = vpow2.f32 %v1365_v13  ;;  %v1379_v5 = vmul.f32 1.442695, %v1270_v51  ;;  %v1250_v42 = vsub.f32 %v2939_v7, %v1178_v45  ;;  %v1381_v19 = vmul.f32 1.442695, %v1271_v26  ;;  %v3916_v26 = vld [vmem:[#allocation8_spill] sm:$0xff] }
 0x295   : > { %v3464_v56 = vpop.eup %2259  ;;  %2285 = vpow2.f32 %v1367_v22  ;;  %v3473_v62 = vpop.permute.xlu1 %1182  ;;  %v1251_v34 = vsub.f32 %v2933_v0, %v1178_v45  ;;  %v1383_v29 = vmul.f32 1.442695, %v1272_v8  ;;  %v1252_v63 = vsub.f32 %v2943_v10, %v1178_v45  ;;  %v3915_v45 = vld [vmem:[#allocation9_spill] sm:$0xff] }
 0x296   : > { %v3467_v14 = vpop.eup %2261  ;;  %2287 = vpow2.f32 %v1329_v61  ;;  %v1417_v31 = vadd.f32 %v3437_v37, %v3432_v36  ;;  %v1337_v7 = vmul.f32 1.442695, %v1249_v9  ;;  %v1277_v12 = vsub.f32 %v3875_v24, %v1213_v11  ;;  %v1223_v2 = vpop.permute.xlu0 %1222 }
 0x297   : > { %v3470_v15 = vpop.eup %2263  ;;  %2289 = vpow2.f32 %v1331_v28  ;;  %v1339_v49 = vmul.f32 1.442695, %v1250_v42  ;;  %v1278_v0 = vsub.f32 %v3079_v59, %v1213_v11  ;;  %v1341_v10 = vmul.f32 1.442695, %v1251_v34 }
 0x298   : > { %v3475_v43 = vpop.eup %2265  ;;  %2291 = vpow2.f32 %v1333_v16  ;;  %v1418_v54 = vadd.f32 %v3439_v20, %v1417_v31  ;;  %v1279_v36 = vsub.f32 %v3881_v41, %v1213_v11  ;;  %v1280_v37 = vsub.f32 %v3887_v53, %v1213_v11 }
 0x299   : > { %v3478_v35 = vpop.eup %2267  ;;  %2293 = vpow2.f32 %v1335_v30  ;;  %v1343_v24 = vmul.f32 1.442695, %v1252_v63  ;;  %v1253_v22 = vsub.f32 %v3914_v40, %v3473_v62  ;;  %v3499_v59 = vpop.permute.xlu1 %1187  ;;  %v1393_v27 = vmul.f32 1.442695, %v1277_v12  ;;  %v3921_v40 = vld [vmem:[#allocation13_spill] sm:$0xff] }
 0x29a   : > { %v3483_v18 = vpop.eup %2269  ;;  %2295 = vpow2.f32 %v1377_v44  ;;  %v1419_v13 = vadd.f32 %v3443_v38, %v1418_v54  ;;  %v1254_v41 = vsub.f32 %v3915_v45, %v3473_v62  ;;  %v1395_v53 = vmul.f32 1.442695, %v1278_v0  ;;  %v3917_v44 = vld [vmem:[#allocation10_spill] sm:$0xff] }
 0x29b   : > { %v3486_v33 = vpop.eup %2271  ;;  %2297 = vpow2.f32 %v1379_v5  ;;  %v1422_v38 = vadd.f32 %v3449_v25, %v3446_v48  ;;  %v1397_v51 = vmul.f32 1.442695, %v1279_v36  ;;  %v1399_v16 = vmul.f32 1.442695, %v1280_v37 }
 0x29c   : > { %v3490_v55 = vpop.eup %2273  ;;  %2299 = vpow2.f32 %v1381_v19  ;;  %1420 = vadd.xlane.f32.xlu1 %v1419_v13  ;;  %v1255_v30 = vsub.f32 %v3916_v26, %v3473_v62  ;;  %v1256_v9 = vsub.f32 %v3917_v44, %v3473_v62  ;;  %v1345_v5 = vmul.f32 1.442695, %v1253_v22 }
 0x29d   : > { %v3494_v6 = vpop.eup %2275  ;;  %2301 = vpow2.f32 %v1383_v29  ;;  %v1423_v42 = vadd.f32 %v3452_v57, %v1422_v38  ;;  %v1347_v48 = vmul.f32 1.442695, %v1254_v41  ;;  %v1285_v25 = vsub.f32 %v3109_v47, %v1223_v2  ;;  %v3918_v29 = vld [vmem:[#allocation32_spill] sm:$0xff] }
 0x29e   : > { %v3501_v20 = vpop.eup %2277  ;;  %2303 = vpow2.f32 %v1337_v7  ;;  %v1427_v19 = vadd.f32 %v3461_v46, %v3458_v3  ;;  %v1286_v63 = vsub.f32 %v3918_v29, %v1223_v2  ;;  %v1287_v31 = vsub.f32 %v3113_v58, %v1223_v2  ;;  %v3526_v7 = vpop.permute.xlu1 %1197  ;;  %v3920_v46 = vld [vmem:[#allocation11_spill] sm:$0xff]  ;;  %v3922_v41 = vld [vmem:[#allocation12_spill] sm:$0xff]  ;;  %v3927_v29 = vld [vmem:[#allocation18_spill] sm:$0xff] }
 0x29f   : > { %v3505_v61 = vpop.eup %2279  ;;  %2305 = vpow2.f32 %v1339_v49  ;;  %v1424_v62 = vadd.f32 %v3455_v60, %v1423_v42  ;;  %v1349_v12 = vmul.f32 1.442695, %v1255_v30  ;;  %v3919_v49 = vld [vmem:[#allocation33_spill] sm:$0xff]  ;;  %v1351_v3 = vmul.f32 1.442695, %v1256_v9  ;;  %v3924_v30 = vld [vmem:[#allocation15_spill] sm:$0xff] }
 0x2a0   : > { %v3509_v28 = vpop.eup %2281  ;;  %2307 = vpow2.f32 %v1341_v10  ;;  %v1288_v0 = vsub.f32 %v3919_v49, %v1223_v2  ;;  %v1428_v47 = vadd.f32 %v3464_v56, %v1427_v19  ;;  %v1257_v10 = vsub.f32 %v3920_v46, %v3499_v59 }
 0x2a1   : > { %v3513_v8 = vpop.eup %2283  ;;  %2309 = vpow2.f32 %v1343_v24  ;;  %1425 = vadd.xlane.f32.xlu0 %v1424_v62  ;;  %v1409_v58 = vmul.f32 1.442695, %v1285_v25  ;;  %v1432_v37 = vadd.f32 %v3475_v43, %v3470_v15  ;;  %v1411_v13 = vmul.f32 1.442695, %v1286_v63  ;;  %v3923_v15 = vld [vmem:[#allocation14_spill] sm:$0xff] }
 0x2a2   : > { %v3518_v11 = vpop.eup %2285  ;;  %2311 = vpow2.f32 %v1393_v27  ;;  %v1429_v60 = vadd.f32 %v3467_v14, %v1428_v47  ;;  %v1413_v56 = vmul.f32 1.442695, %v1287_v31  ;;  %v1258_v22 = vsub.f32 %v3921_v40, %v3499_v59  ;;  %v3928_v47 = vld [vmem:[#allocation21_spill] sm:$0xff] }
 0x2a3   : > { %v2288_v34 = vpop.eup %2287  ;;  %2313 = vpow2.f32 %v1395_v53  ;;  %v1415_v45 = vmul.f32 1.442695, %v1288_v0  ;;  %v1259_v53 = vsub.f32 %v3922_v41, %v3499_v59  ;;  %v1433_v14 = vadd.f32 %v3478_v35, %v1432_v37  ;;  %v3925_v35 = vld [vmem:[#allocation17_spill] sm:$0xff] }
 0x2a4   : > { %v2290_v57 = vpop.eup %2289  ;;  %2315 = vpow2.f32 %v1397_v51  ;;  %v1260_v43 = vsub.f32 %v3923_v15, %v3499_v59  ;;  %v1353_v38 = vmul.f32 1.442695, %v1257_v10  ;;  %v1208_v51 = vpop.permute.xlu1 %1207  ;;  %v1265_v44 = vsub.f32 %v3924_v30, %v3526_v7  ;;  %v3929_v10 = vld [vmem:[#allocation23_spill] sm:$0xff]  ;;  %v3933_v30 = vld [vmem:[#allocation30_spill] sm:$0xff] }
 0x2a5   : > { %v2292_v54 = vpop.eup %2291  ;;  %2317 = vpow2.f32 %v1399_v16  ;;  %1430 = vadd.xlane.f32.xlu0 %v1429_v60  ;;  %v1437_v16 = vadd.f32 %v3490_v55, %v3486_v33  ;;  %v1266_v9 = vsub.f32 %v3925_v35, %v3526_v7  ;;  %v1355_v59 = vmul.f32 1.442695, %v1258_v22  ;;  %v3926_v33 = vld [vmem:[#allocation16_spill] sm:$0xff] }
 0x2a6   : > { %v2294_v36 = vpop.eup %2293  ;;  %2319 = vpow2.f32 %v1345_v5  ;;  %v1434_v5 = vadd.f32 %v3483_v18, %v1433_v14  ;;  %v1357_v19 = vmul.f32 1.442695, %v1259_v53  ;;  %v1267_v55 = vsub.f32 %v3926_v33, %v3526_v7  ;;  %v3931_v22 = vld [vmem:[#allocation24_spill] sm:$0xff] }
 0x2a7   : > { %v3535_v24 = vpop.eup %2295  ;;  %2321 = vpow2.f32 %v1347_v48  ;;  %v1438_v48 = vadd.f32 %v3494_v6, %v1437_v16  ;;  %v1268_v63 = vsub.f32 %v3927_v29, %v3526_v7  ;;  %v1359_v62 = vmul.f32 1.442695, %v1260_v43  ;;  %v3932_v43 = vld [vmem:[#allocation28_spill] sm:$0xff]  ;;  %v3935_v29 = vld [vmem:[#allocation31_spill] sm:$0xff] }
 0x2a8   : > { %v3539_v27 = vpop.eup %2297  ;;  %2323 = vpow2.f32 %v1349_v12  ;;  %1435 = vadd.xlane.f32.xlu1 %v1434_v5  ;;  %v1442_v12 = vadd.f32 %v2290_v57, %v2288_v34  ;;  %v1369_v0 = vmul.f32 1.442695, %v1265_v44  ;;  %v1371_v6 = vmul.f32 1.442695, %v1266_v9  ;;  %v1218_v60 = vpop.permute.xlu1 %1217 }
 0x2a9   : > { %v3544_v2 = vpop.eup %2299  ;;  %2325 = vpow2.f32 %v1351_v3  ;;  %v1439_v18 = vadd.f32 %v3501_v20, %v1438_v48  ;;  %v1273_v3 = vsub.f32 %v3928_v47, %v1208_v51  ;;  %v1375_v40 = vmul.f32 1.442695, %v1268_v63  ;;  %v3930_v20 = vld [vmem:[#allocation22_spill] sm:$0xff] }
 0x2aa   : > { %v3550_v26 = vpop.eup %2301  ;;  %2327 = vpow2.f32 %v1409_v58  ;;  %v1274_v58 = vsub.f32 %v3929_v10, %v1208_v51  ;;  %v1443_v7 = vadd.f32 %v2292_v54, %v1442_v12  ;;  %v1275_v34 = vsub.f32 %v3930_v20, %v1208_v51 }
 0x2ab   : > { %v2304_v42 = vpop.eup %2303  ;;  %2329 = vpow2.f32 %v1411_v13  ;;  %1440 = vadd.xlane.f32.xlu0 %v1439_v18  ;;  %v1385_v15 = vmul.f32 1.442695, %v1273_v3  ;;  %v1282_v44 = vsub.f32 %v3933_v30, %v1218_v60  ;;  %v1284_v63 = vsub.f32 %v3935_v29, %v1218_v60 }
 0x2ac   : > { %v2306_v25 = vpop.eup %2305  ;;  %2331 = vpow2.f32 %v1413_v56  ;;  %v1373_v56 = vmul.f32 1.442695, %v1267_v55  ;;  %v1444_v41 = vadd.f32 %v2294_v36, %v1443_v7  ;;  %v1387_v16 = vmul.f32 1.442695, %v1274_v58 }
 0x2ad   : > { %v2308_v31 = vpop.eup %2307  ;;  %2333 = vpow2.f32 %v1415_v45  ;;  %v1447_v37 = vadd.f32 %v2306_v25, %v2304_v42  ;;  %v1276_v45 = vsub.f32 %v3931_v22, %v1208_v51  ;;  %v1389_v5 = vmul.f32 1.442695, %v1275_v34  ;;  %v3934_v42 = vld [vmem:[#allocation29_spill] sm:$0xff] }
 0x2ae   : > { %v2310_v49 = vpop.eup %2309  ;;  %2335 = vpow2.f32 %v1353_v38  ;;  %v1281_v38 = vsub.f32 %v3932_v43, %v1218_v60  ;;  %1445 = vadd.xlane.f32.xlu1 %v1444_v41  ;;  %v1283_v51 = vsub.f32 %v3934_v42, %v1218_v60  ;;  %v1462_v25 = vadd.f32 %v3509_v28, %v3505_v61 }
 0x2af   : > { %v2312_v46 = vpop.eup %2311  ;;  %2337 = vpow2.f32 %v1355_v59  ;;  %v1448_v53 = vadd.f32 %v2308_v31, %v1447_v37  ;;  %v1391_v59 = vmul.f32 1.442695, %v1276_v45  ;;  %v1403_v31 = vmul.f32 1.442695, %v1282_v44 }
 0x2b0   : > { %v2314_v13 = vpop.eup %2313  ;;  %2339 = vpow2.f32 %v1357_v19  ;;  %v1401_v33 = vmul.f32 1.442695, %v1281_v38  ;;  %v1405_v12 = vmul.f32 1.442695, %v1283_v51  ;;  %v1472_v61 = vadd.f32 %v3539_v27, %v3535_v24 }
 0x2b1   : > { %v2316_v57 = vpop.eup %2315  ;;  %2341 = vpow2.f32 %v1359_v62  ;;  %v1449_v35 = vadd.f32 %v2310_v49, %v1448_v53  ;;  %v1407_v3 = vmul.f32 1.442695, %v1284_v63  ;;  %v1482_v58 = vadd.f32 %v2314_v13, %v2312_v46  ;;  %v3938_v63 = vld [vmem:[#allocation42_spill] sm:$0xff] }
 0x2b2   : > { %v3567_v14 = vpop.eup %2317  ;;  %2343 = vpow2.f32 %v1369_v0 }
 0x2b3   : > { %v2320_v54 = vpop.eup %2319  ;;  %2345 = vpow2.f32 %v1371_v6  ;;  %1450 = vadd.xlane.f32.xlu0 %v1449_v35  ;;  %v1463_v6 = vadd.f32 %v3513_v8, %v1462_v25  ;;  %v1483_v27 = vadd.f32 %v2316_v57, %v1482_v58 }
 0x2b4   : > { %v2322_v9 = vpop.eup %2321  ;;  %2347 = vpow2.f32 %v1373_v56  ;;  %v1473_v56 = vadd.f32 %v3544_v2, %v1472_v61 }
 0x2b5   : > { %v2324_v36 = vpop.eup %2323  ;;  %2349 = vpow2.f32 %v1375_v40  ;;  %v1452_v48 = vadd.f32 %v2322_v9, %v2320_v54  ;;  %v1464_v37 = vadd.f32 %v3518_v11, %v1463_v6  ;;  %v1484_v54 = vadd.f32 %v3567_v14, %v1483_v27 }
 0x2b6   : > { %v2326_v19 = vpop.eup %2325  ;;  %2351 = vpow2.f32 %v1385_v15  ;;  %v1474_v41 = vadd.f32 %v3550_v26, %v1473_v56 }
 0x2b7   : > { %v2328_v55 = vpop.eup %2327  ;;  %2353 = vpow2.f32 %v1387_v16  ;;  %v1453_v62 = vadd.f32 %v2324_v36, %v1452_v48  ;;  %v3936_v48 = vld [vmem:[#allocation41_spill] sm:$0xff] }
 0x2b8   : > { %v2330_v18 = vpop.eup %2329  ;;  %2355 = vpow2.f32 %v1389_v5 }
 0x2b9   : > { %v2332_v49 = vpop.eup %2331  ;;  %2357 = vpow2.f32 %v1391_v59  ;;  %v1454_v0 = vadd.f32 %v2326_v19, %v1453_v62  ;;  %v1492_v46 = vadd.f32 %v2330_v18, %v2328_v55  ;;  %v3939_v18 = vld [vmem:[#allocation46_spill] sm:$0xff] }
 0x2ba   : > { %v2334_v28 = vpop.eup %2333  ;;  %2359 = vpow2.f32 %v1401_v33  ;;  %v3937_v33 = vld [vmem:[#allocation45_spill] sm:$0xff] }
 0x2bb   : > { %v2336_v47 = vpop.eup %2335  ;;  %2361 = vpow2.f32 %v1403_v31  ;;  %1455 = vadd.xlane.f32.xlu1 %v1454_v0  ;;  %v1493_v16 = vadd.f32 %v2332_v49, %v1492_v46 }
 0x2bc   : > { %v2338_v10 = vpop.eup %2337  ;;  %2363 = vpow2.f32 %v1405_v12 }
 0x2bd   : > { %v2340_v60 = vpop.eup %2339  ;;  %v1457_v7 = vadd.f32 %v2338_v10, %v2336_v47  ;;  %2365 = vpow2.f32 %v1407_v3  ;;  %v1494_v5 = vadd.f32 %v2334_v28, %v1493_v16  ;;  %v3940_v28 = vld [vmem:[#allocation19_spill] sm:$0xff] }
 0x2be   : > { %v2342_v40 = vpop.eup %2341 }
 0x2bf   : > { %v2344_v8 = vpop.eup %2343  ;;  %v1458_v20 = vadd.f32 %v2340_v60, %v1457_v7  ;;  %1465 = vadd.xlane.f32.xlu1 %v1464_v37  ;;  %v3941_v37 = vld [vmem:[#allocation20_spill] sm:$0xff] }
 0x2c0   : > { %v2346_v24 = vpop.eup %2345 }
 0x2c1   : > { %v2348_v34 = vpop.eup %2347  ;;  %v1459_v22 = vadd.f32 %v2342_v40, %v1458_v20  ;;  %v1467_v45 = vadd.f32 %v2346_v24, %v2344_v8  ;;  %v3942_v24 = vld [vmem:[#allocation25_spill] sm:$0xff] }
 0x2c2   : > { %v2350_v13 = vpop.eup %2349 }
 0x2c3   : > { %v2352_v53 = vpop.eup %2351  ;;  %1460 = vadd.xlane.f32.xlu0 %v1459_v22  ;;  %v1468_v15 = vadd.f32 %v2348_v34, %v1467_v45  ;;  %1475 = vadd.xlane.f32.xlu1 %v1474_v41  ;;  %v3943_v45 = vld [vmem:[#allocation26_spill] sm:$0xff] }
 0x2c4   : > { %v2354_v11 = vpop.eup %2353 }
 0x2c5   : > { %v2356_v2 = vpop.eup %2355  ;;  %v1469_v43 = vadd.f32 %v2350_v13, %v1468_v15  ;;  %v1477_v38 = vadd.f32 %v2354_v11, %v2352_v53  ;;  %v3944_v15 = vld [vmem:[#allocation34_spill] sm:$0xff] }
 0x2c6   : > { %v2358_v30 = vpop.eup %2357 }
 0x2c7   : > { %v2360_v57 = vpop.eup %2359  ;;  %1470 = vadd.xlane.f32.xlu0 %v1469_v43  ;;  %v1478_v44 = vadd.f32 %v2356_v2, %v1477_v38  ;;  %1485 = vadd.xlane.f32.xlu1 %v1484_v54  ;;  %v3945_v54 = vld [vmem:[#allocation49_spill] sm:$0xff] }
 0x2c8   : > { %v2362_v26 = vpop.eup %2361 }
 0x2c9   : > { %v1479_v35 = vadd.f32 %v2358_v30, %v1478_v44  ;;  %v1487_v9 = vadd.f32 %v2362_v26, %v2360_v57  ;;  %v2364_v42 = vpop.eup %2363  ;;  %v3946_v57 = vld [vmem:[#allocation27_spill] sm:$0xff] }
 0x2ca   : > { %v2366_v36 = vpop.eup %2365 }
 0x2cb   : > { %1480 = vadd.xlane.f32.xlu0 %v1479_v35  ;;  %v1488_v51 = vadd.f32 %v2364_v42, %v1487_v9  ;;  %1495 = vadd.xlane.f32.xlu1 %v1494_v5  ;;  %v3947_v5 = vld [vmem:[#allocation36_spill] sm:$0xff] }
 0x2cd   : > { %v1489_v59 = vadd.f32 %v2366_v36, %v1488_v51  ;;  %v3948_v51 = vld [vmem:[#allocation50_spill] sm:$0xff] }
 0x2cf   : > { %1490 = vadd.xlane.f32.xlu0 %v1489_v59 }
 0x325   : > { %v1421_v14 = vpop.xlane.xlu1 %1420 }
 0x326   : > { %v1497_v25 = vadd.f32 %v1421_v14, %v3936_v48 }
 0x328   : > { %1530 = vst.msk [vmem:[%s3313_s16] sm:$0xff] %vm1513_vm5, %v1497_v25  ;;  %2367 = vlog2.f32 %v1497_v25 }
 0x32a   : > { %v1426_v19 = vpop.xlane.xlu0 %1425 }
 0x32b   : > { %v1498_v55 = vadd.f32 %v1426_v19, %v3937_v33  ;;  %v3949_v19 = vld [vmem:[#allocation51_spill] sm:$0xff] }
 0x32d   : > { %1531 = vst.msk [vmem:[%s3313_s16 + $0x8] sm:$0xff] %vm1513_vm5, %v1498_v55  ;;  %2369 = vlog2.f32 %v1498_v55  ;;  %v3950_v55 = vld [vmem:[#allocation35_spill] sm:$0xff] }
 0x32e   : > { %v1431_v29 = vpop.xlane.xlu0 %1430 }
 0x32f   : > { %v1499_v31 = vadd.f32 %v1431_v29, %v3938_v63 }
 0x331   : > { %1532 = vst.msk [vmem:[%s3313_s16 + $0x10] sm:$0xff] %vm1513_vm5, %v1499_v31  ;;  %2371 = vlog2.f32 %v1499_v31  ;;  %v1436_v62 = vpop.xlane.xlu1 %1435 }
 0x332   : > { %v1500_v12 = vadd.f32 %v1436_v62, %v3939_v18 }
 0x334   : > { %1533 = vst.msk [vmem:[%s3313_s16 + $0x18] sm:$0xff] %vm1513_vm5, %v1500_v12  ;;  %2373 = vlog2.f32 %v1500_v12  ;;  %v1441_v0 = vpop.xlane.xlu0 %1440  ;;  %v3951_v12 = vld [vmem:[#allocation37_spill] sm:$0xff] }
 0x335   : > { %v2368_v49 = vpop.eup %2367  ;;  %v1501_v61 = vadd.f32 %v1441_v0, %v3365_v52 }
 0x336   : > { %v1547_v6 = vmul.f32 0.6931472, %v2368_v49 }
 0x337   : > { %1534 = vst.msk [vmem:[%s3313_s16 + $0x20] sm:$0xff] %vm1513_vm5, %v1501_v61  ;;  %2375 = vlog2.f32 %v1501_v61  ;;  %v1446_v3 = vpop.xlane.xlu1 %1445 }
 0x338   : > { %v1578_v47 = vadd.f32 %v1547_v6, %v3940_v28  ;;  %v1502_v10 = vadd.f32 %v1446_v3, %v3367_v17  ;;  %v3952_v28 = vld [vmem:[#allocation38_spill] sm:$0xff] }
 0x33a   : > { %1594 = vst.msk [vmem:[%s3126_s21] sm:$0xff] %vm1513_vm5, %v1578_v47  ;;  %v2370_v58 = vpop.eup %2369  ;;  %1535 = vst.msk [vmem:[%s3313_s16 + $0x28] sm:$0xff] %vm1513_vm5, %v1502_v10  ;;  %2377 = vlog2.f32 %v1502_v10  ;;  %v3953_v10 = vld [vmem:[#allocation39_spill] sm:$0xff] }
 0x33b   : > { %v1549_v7 = vmul.f32 0.6931472, %v2370_v58 }
 0x33c   : > { %v1451_v60 = vpop.xlane.xlu0 %1450 }
 0x33d   : > { %v1503_v52 = vadd.f32 %v1451_v60, %v3383_v39  ;;  %v1579_v56 = vadd.f32 %v1549_v7, %v3941_v37 }
 0x33e   : > { %v2372_v40 = vpop.eup %2371 }
 0x33f   : > { %1536 = vst.msk [vmem:[%s3313_s16 + $0x30] sm:$0xff] %vm1513_vm5, %v1503_v52  ;;  %2379 = vlog2.f32 %v1503_v52  ;;  %1595 = vst.msk [vmem:[%s3126_s21 + $0x8] sm:$0xff] %vm1513_vm5, %v1579_v56  ;;  %v1551_v17 = vmul.f32 0.6931472, %v2372_v40  ;;  %v3954_v52 = vld [vmem:[#allocation40_spill] sm:$0xff]  ;;  %v3955_v40 = vld [vmem:[#allocation43_spill] sm:$0xff] }
 0x341   : > { %v2374_v20 = vpop.eup %2373  ;;  %v1580_v27 = vadd.f32 %v1551_v17, %v3942_v24 }
 0x342   : > { %v1553_v22 = vmul.f32 0.6931472, %v2374_v20 }
 0x343   : > { %1596 = vst.msk [vmem:[%s3126_s21 + $0x10] sm:$0xff] %vm1513_vm5, %v1580_v27  ;;  %v3956_v27 = vld [vmem:[#allocation44_spill] sm:$0xff] }
 0x344   : > { %v1456_v8 = vpop.xlane.xlu1 %1455  ;;  %v2376_v39 = vpop.eup %2375  ;;  %v1581_v41 = vadd.f32 %v1553_v22, %v3943_v45 }
 0x345   : > { %v1504_v34 = vadd.f32 %v1456_v8, %v3381_v4  ;;  %v1555_v13 = vmul.f32 0.6931472, %v2376_v39  ;;  %v3957_v39 = vld [vmem:[#allocation47_spill] sm:$0xff] }
 0x346   : > { %1597 = vst.msk [vmem:[%s3126_s21 + $0x18] sm:$0xff] %vm1513_vm5, %v1581_v41 }
 0x347   : > { %1537 = vst.msk [vmem:[%s3313_s16 + $0x38] sm:$0xff] %vm1513_vm5, %v1504_v34  ;;  %2381 = vlog2.f32 %v1504_v34  ;;  %v1582_v4 = vadd.f32 %v1555_v13, %v3944_v15  ;;  %v2378_v11 = vpop.eup %2377 }
 0x348   : > { %v1466_v46 = vpop.xlane.xlu1 %1465  ;;  %v1557_v38 = vmul.f32 0.6931472, %v2378_v11 }
 0x349   : > { %v1506_v53 = vadd.f32 %v1466_v46, %v3388_v21  ;;  %1598 = vst.msk [vmem:[%s3126_s21 + $0x20] sm:$0xff] %vm1513_vm5, %v1582_v4  ;;  %v3958_v46 = vld [vmem:[#allocation48_spill] sm:$0xff] }
 0x34a   : > { %v1583_v44 = vadd.f32 %v1557_v38, %v3946_v57 }
 0x34b   : > { %1539 = vst.msk [vmem:[%s3313_s16 + $0x48] sm:$0xff] %vm1513_vm5, %v1506_v53  ;;  %2383 = vlog2.f32 %v1506_v53 }
 0x34c   : > { %v1461_v2 = vpop.xlane.xlu0 %1460  ;;  %v1476_v43 = vpop.xlane.xlu1 %1475  ;;  %1599 = vst.msk [vmem:[%s3126_s21 + $0x28] sm:$0xff] %vm1513_vm5, %v1583_v44 }
 0x34d   : > { %v1505_v16 = vadd.f32 %v1461_v2, %v3945_v54  ;;  %v1508_v21 = vadd.f32 %v1476_v43, %v3395_v1  ;;  %v2380_v30 = vpop.eup %2379 }
 0x34e   : > { %v1559_v26 = vmul.f32 0.6931472, %v2380_v30 }
 0x34f   : > { %1538 = vst.msk [vmem:[%s3313_s16 + $0x40] sm:$0xff] %vm1513_vm5, %v1505_v16  ;;  %2385 = vlog2.f32 %v1505_v16  ;;  %1541 = vst.msk [vmem:[%s3313_s16 + $0x58] sm:$0xff] %vm1513_vm5, %v1508_v21 }
 0x350   : > { %2387 = vlog2.f32 %v1508_v21  ;;  %v1471_v35 = vpop.xlane.xlu0 %1470  ;;  %v1486_v9 = vpop.xlane.xlu1 %1485  ;;  %v1584_v42 = vadd.f32 %v1559_v26, %v3947_v5 }
 0x351   : > { %v1507_v1 = vadd.f32 %v1471_v35, %v3397_v50  ;;  %v1510_v36 = vadd.f32 %v1486_v9, %v3948_v51 }
 0x352   : > { %1600 = vst.msk [vmem:[%s3126_s21 + $0x30] sm:$0xff] %vm1513_vm5, %v1584_v42 }
 0x353   : > { %1540 = vst.msk [vmem:[%s3313_s16 + $0x50] sm:$0xff] %vm1513_vm5, %v1507_v1  ;;  %2389 = vlog2.f32 %v1507_v1  ;;  %1543 = vst.msk [vmem:[%s3313_s16 + $0x68] sm:$0xff] %vm1513_vm5, %v1510_v36 }
 0x354   : > { %v2382_v59 = vpop.eup %2381  ;;  %2391 = vlog2.f32 %v1510_v36  ;;  %v1481_v14 = vpop.xlane.xlu0 %1480 }
 0x355   : > { %v1496_v48 = vpop.xlane.xlu1 %1495  ;;  %v1561_v25 = vmul.f32 0.6931472, %v2382_v59  ;;  %v1509_v33 = vadd.f32 %v1481_v14, %v3949_v19 }
 0x356   : > { %v1512_v50 = vadd.f32 %v1496_v48, %v3409_v23 }
 0x357   : > { %v1585_v29 = vadd.f32 %v1561_v25, %v3950_v55  ;;  %1542 = vst.msk [vmem:[%s3313_s16 + $0x60] sm:$0xff] %vm1513_vm5, %v1509_v33  ;;  %2393 = vlog2.f32 %v1509_v33 }
 0x358   : > { %1545 = vst.msk [vmem:[%s3313_s16 + $0x78] sm:$0xff] %vm1513_vm5, %v1512_v50  ;;  %v2384_v63 = vpop.eup %2383  ;;  %2395 = vlog2.f32 %v1512_v50  ;;  %v1491_v31 = vpop.xlane.xlu0 %1490 }
 0x359   : > { %1601 = vst.msk [vmem:[%s3126_s21 + $0x38] sm:$0xff] %vm1513_vm5, %v1585_v29  ;;  %v1565_v62 = vmul.f32 0.6931472, %v2384_v63  ;;  %v1511_v18 = vadd.f32 %v1491_v31, %v3411_v32 }
 0x35b   : > { %v1587_v23 = vadd.f32 %v1565_v62, %v3951_v12  ;;  %1544 = vst.msk [vmem:[%s3313_s16 + $0x70] sm:$0xff] %vm1513_vm5, %v1511_v18  ;;  %2397 = vlog2.f32 %v1511_v18 }
 0x35c   : > { %v2386_v49 = vpop.eup %2385 }
 0x35d   : > { %v2388_v0 = vpop.eup %2387  ;;  %1603 = vst.msk [vmem:[%s3126_s21 + $0x48] sm:$0xff] %vm1513_vm5, %v1587_v23  ;;  %v1563_v6 = vmul.f32 0.6931472, %v2386_v49 }
 0x35e   : > { %v1569_v61 = vmul.f32 0.6931472, %v2388_v0 }
 0x35f   : > { %v1586_v47 = vadd.f32 %v1563_v6, %v3952_v28 }
 0x360   : > { %v2390_v3 = vpop.eup %2389  ;;  %v1589_v58 = vadd.f32 %v1569_v61, %v3953_v10 }
 0x361   : > { %v2392_v60 = vpop.eup %2391  ;;  %1602 = vst.msk [vmem:[%s3126_s21 + $0x40] sm:$0xff] %vm1513_vm5, %v1586_v47  ;;  %v1567_v32 = vmul.f32 0.6931472, %v2390_v3 }
 0x362   : > { %1605 = vst.msk [vmem:[%s3126_s21 + $0x58] sm:$0xff] %vm1513_vm5, %v1589_v58  ;;  %v1573_v7 = vmul.f32 0.6931472, %v2392_v60 }
 0x363   : > { %v1588_v37 = vadd.f32 %v1567_v32, %v3954_v52 }
 0x364   : > { %v2394_v56 = vpop.eup %2393  ;;  %v1591_v17 = vadd.f32 %v1573_v7, %v3955_v40 }
 0x365   : > { %v2396_v8 = vpop.eup %2395  ;;  %1604 = vst.msk [vmem:[%s3126_s21 + $0x50] sm:$0xff] %vm1513_vm5, %v1588_v37  ;;  %v1571_v20 = vmul.f32 0.6931472, %v2394_v56 }
 0x366   : > { %1607 = vst.msk [vmem:[%s3126_s21 + $0x68] sm:$0xff] %vm1513_vm5, %v1591_v17  ;;  %v1577_v24 = vmul.f32 0.6931472, %v2396_v8 }
 0x367   : > { %v1590_v34 = vadd.f32 %v1571_v20, %v3956_v27 }
 0x368   : > { %v2398_v22 = vpop.eup %2397  ;;  %v1593_v45 = vadd.f32 %v1577_v24, %v3957_v39 }
 0x369   : > { %1606 = vst.msk [vmem:[%s3126_s21 + $0x60] sm:$0xff] %vm1513_vm5, %v1590_v34  ;;  %v1575_v41 = vmul.f32 0.6931472, %v2398_v22  ;;  %1616 = sbr.rel (!%p2628_p9) target bundleno = 919 (0x397), region = 63 }
 0x36a   : > { %1609 = vst.msk [vmem:[%s3126_s21 + $0x78] sm:$0xff] %vm1513_vm5, %v1593_v45 }
 0x36b   : > { %v1592_v13 = vadd.f32 %v1575_v41, %v3958_v46 }
 0x36d   : > { %1608 = vst.msk [vmem:[%s3126_s21 + $0x70] sm:$0xff] %vm1513_vm5, %v1592_v13 }
 0x36e   : > { %s3979_s28 = smov (!%p1619_p3, %s1618_s28), 16 }
 0x36f   : > { %s1991_s7 = sshll.u32 %s3979_s28, 7 }
 0x370   : > { %p1994_p4 = scmp.eq.s32.totalorder %s1991_s7, 0 }
 0x371   : > { %s3691_s8 = sshrl.u32 (!%p1994_p4), %s3979_s28, 4 }
 0x372   : > { %1627 = sbr.rel (%p1994_p4) target bundleno = 919 (0x397), region = 67  ;;  %p1995_p5 = scmp.le.s32.totalorder (!%p1994_p4), %s3691_s8, 0 }
 0x377   : > { %1865 = sbr.rel (%p1995_p5) target bundleno = 902 (0x386), region = 158  ;;  %s3959_s30 = smov (!%p1995_p5), %s3685_s6 }
 0x378   : > { %s3960_s12 = smov (!%p1995_p5), %s3126_s21  ;;  %s3700_s9 = smov (!%p1995_p5), 0  }
 0x379   : > { %s3702_s10 = smov (!%p1995_p5), 0  }
 0x37c LB: >> { %v1720_v53 = vld [vmem:[%s2509_s12] sm:$0xff]  ;;  %v1722_v15 = vld [vmem:[%s2509_s12 + $0x8] sm:$0xff]  ;;  %v1724_v4 = vld [vmem:[%s2509_s12 + $0x10] sm:$0xff]  ;;  %s1752_s11 = sadd.s32 1, %s2513_s9  ;;  %s1714_s10 = sadd.s32 1, %s2517_s10   ;;  %s2517_s10 = sphi %s3702_s10, %s1714_s10   ;;  %s2513_s9 = sphi %s3700_s9, %s3961_s9   ;;  %s2509_s12 = sphi %s3960_s12, %s1757_s12   ;;  %s2505_s30 = sphi %s3959_s30, %s1758_s30  }
 0x37d   : >> { %1721 = vst [vmem:[%s2505_s30] sm:$0xff] %v1720_v53  ;;  %1723 = vst [vmem:[%s2505_s30 + $0x8] sm:$0xff] %v1722_v15  ;;  %v1726_v11 = vld [vmem:[%s2509_s12 + $0x18] sm:$0xff]  ;;  %v1728_v2 = vld [vmem:[%s2509_s12 + $0x20] sm:$0xff]  ;;  %p1753_p6 = scmp.ge.s32.totalorder %s1752_s11, %s3691_s8  ;;  %p1713_p7 = scmp.ge.s32.totalorder %s1714_s10, %s3691_s8 }
 0x37e   : >> { %1725 = vst [vmem:[%s2505_s30 + $0x10] sm:$0xff] %v1724_v4  ;;  %v1730_v43 = vld [vmem:[%s2509_s12 + $0x28] sm:$0xff]  ;;  %1727 = vst [vmem:[%s2505_s30 + $0x18] sm:$0xff] %v1726_v11  ;;  %v1732_v38 = vld [vmem:[%s2509_s12 + $0x30] sm:$0xff] }
 0x37f   : >> { %1729 = vst [vmem:[%s2505_s30 + $0x20] sm:$0xff] %v1728_v2  ;;  %1731 = vst [vmem:[%s2505_s30 + $0x28] sm:$0xff] %v1730_v43  ;;  %v1734_v54 = vld [vmem:[%s2509_s12 + $0x38] sm:$0xff]  ;;  %v1736_v16 = vld [vmem:[%s2509_s12 + $0x40] sm:$0xff]  ;;  %s3981_s11 = smov (%p1753_p6, %s1752_s11), 0 }
 0x380   : >> { %1733 = vst [vmem:[%s2505_s30 + $0x30] sm:$0xff] %v1732_v38  ;;  %1735 = vst [vmem:[%s2505_s30 + $0x38] sm:$0xff] %v1734_v54  ;;  %v1738_v21 = vld [vmem:[%s2509_s12 + $0x48] sm:$0xff]  ;;  %v1740_v30 = vld [vmem:[%s2509_s12 + $0x50] sm:$0xff]  ;;  %s1996_s24 = sshll.u32 %s3981_s11, 7  ;;  %s3961_s9 = smov %s3981_s11 }
 0x381   : >> { %1737 = vst [vmem:[%s2505_s30 + $0x40] sm:$0xff] %v1736_v16  ;;  %v1742_v57 = vld [vmem:[%s2509_s12 + $0x58] sm:$0xff]  ;;  %1739 = vst [vmem:[%s2505_s30 + $0x48] sm:$0xff] %v1738_v21  ;;  %v1744_v44 = vld [vmem:[%s2509_s12 + $0x60] sm:$0xff]  ;;  %1716 = sbr.rel (!%p1713_p7) target bundleno = 892 (0x37c), region = 164 }
 0x382   : >> { %1741 = vst [vmem:[%s2505_s30 + $0x50] sm:$0xff] %v1740_v30  ;;  %1743 = vst [vmem:[%s2505_s30 + $0x58] sm:$0xff] %v1742_v57  ;;  %v1746_v26 = vld [vmem:[%s2509_s12 + $0x68] sm:$0xff]  ;;  %v1748_v35 = vld [vmem:[%s2509_s12 + $0x70] sm:$0xff] }
 0x383   : >> { %1745 = vst [vmem:[%s2505_s30 + $0x60] sm:$0xff] %v1744_v44  ;;  %1747 = vst [vmem:[%s2505_s30 + $0x68] sm:$0xff] %v1746_v26  ;;  %v1750_v9 = vld [vmem:[%s2509_s12 + $0x78] sm:$0xff]  ;;  %s1757_s12 = scalar_lea.vmem %s3126_s21, %s1996_s24 [#allocation5]  }
 0x384   : >> { %1749 = vst [vmem:[%s2505_s30 + $0x70] sm:$0xff] %v1748_v35  ;;  %1751 = vst [vmem:[%s2505_s30 + $0x78] sm:$0xff] %v1750_v9  ;;  %s1758_s30 = scalar_lea.vmem %s3685_s6, %s1996_s24  }
 0x386 PF: > { %s3760_s26 = sand.u32 15, %s3979_s28   ;;  %s2008_s17 = sshll.u32 %s3691_s8, 7 }
 0x387   : > { %s1763_s25 = scalar_lea.vmem %s3126_s21, %s2008_s17 [#allocation5]   ;;  %s1765_s14 = scalar_lea.vmem %s3685_s6, %s2008_s17  }
 0x388   : > { %p2001_p8 = scmp.le.s32.totalorder %s3760_s26, 0 }
 0x389   : > { %s2519_s16 = smov (!%p2001_p8), %s1765_s14   ;;  %s2523_s4 = smov (!%p2001_p8), %s1763_s25  }
 0x38a   : > { %1879 = sbr.rel (%p2001_p8) target bundleno = 919 (0x397), region = 169  ;;  %s2527_s5 = smov (!%p2001_p8), 0  }
 0x38b   : > { %s2531_s7 = smov (!%p2001_p8), 0  }
 0x38f LB: >> { %v1775_v5 = vld [vmem:[%s2525_s4] sm:$0xff]  ;;  %s1777_s28 = sadd.s32 1, %s2529_s5  ;;  %s1769_s7 = sadd.s32 1, %s2533_s7   ;;  %s2533_s7 = sphi %s2531_s7, %s1769_s7   ;;  %s2529_s5 = sphi %s2527_s5, %s2528_s5   ;;  %s2525_s4 = sphi %s2523_s4, %s1782_s4   ;;  %s2521_s16 = sphi %s2519_s16, %s1783_s16  }
 0x390   : >> { %1776 = vst [vmem:[%s2521_s16] sm:$0xff] %v1775_v5  ;;  %p1778_p9 = scmp.ge.s32.totalorder %s1777_s28, %s3760_s26  ;;  %p1768_p10 = scmp.ge.s32.totalorder %s1769_s7, %s3760_s26 }
 0x392   : >> { %s3983_s28 = smov (%p1778_p9, %s1777_s28), 0  ;;  %1771 = sbr.rel (!%p1768_p10) target bundleno = 911 (0x38f), region = 175 }
 0x393   : >> { %s2002_s21 = sshll.u32 %s3983_s28, 3  ;;  %s2528_s5 = smov %s3983_s28  }
 0x394   : >> { %s1782_s4 = scalar_lea.vmem %s1763_s25, %s2002_s21 [#allocation5]   ;;  %s1783_s16 = scalar_lea.vmem %s1765_s14, %s2002_s21  }
 0x397 PF: > { %s13_s20 = sadd.s32 1, %s2501_s20   ;;  %s3962_s12 = smov %s2473_s13 }
 0x398   : > { %p10_p11 = scmp.ge.s32.totalorder %s13_s20, 6   ;;  %s3963_s13 = smov %s2619_s27 }
 0x399   : > { %s3964_s14 = smov %s2481_s15  ;;  %s3965_s15 = smov %s2626_s29 }
 0x39a   : > { %s3966_s16 = smov %s2493_s18  ;;  %s3967_s17 = smov %s2497_s19 }
 0x39b   : > { %s3968_s18 = smov %s3971_s22  ;;  %s3969_s19 = smov %s3975_s23 }
 0x39c   :  { %12 = sbr.rel (!%p10_p11) target bundleno = 5 (0x5), region = 186 }

</bundles_post_ra>
